<compile_context>
chip_gen: v7x
topology: tpu7x:2x2x1
jax: 0.10.0
libtpu: 0.0.40
codegen_flags: <defaults>
</compile_context>

<pallas_src>
import functools
import math

import jax
import jax.numpy as jnp
import numpy as np
from jax.experimental import pallas as pl
from jax.experimental.pallas import tpu as pltpu


# ----------------------------------------------------------------------------
# Small GraniteConfig-consistent configuration
# ----------------------------------------------------------------------------
class Cfg:
    src_vocab_size = 256
    emb_dim = 64
    norm_eps = 1e-5
    nheads = 4
    kvheads = 0            # 0 -> same as nheads (MHA); GQA not implemented
    nlayers = 2
    pad_id = -1            # nn.Embedding padding_idx=-1 -> last vocab row
    hidden_grow_factor = 8 / 3
    multiple_of = 32
    rope_theta = 10000.0
    embedding_multiplier = 2.0
    logits_scaling = 4.0
    residual_multiplier = 0.5
    attention_multiplier = 0.25   # passed to SDPA as `scale`

    @property
    def head_dim(self):
        return self.emb_dim // self.nheads

    @property
    def hidden_dim(self):
        h = int(self.hidden_grow_factor * self.emb_dim)
        return self.multiple_of * ((h + self.multiple_of - 1) // self.multiple_of)


# ----------------------------------------------------------------------------
# Kernel helpers
# ----------------------------------------------------------------------------
def _rmsnorm(x, w, eps):
    # LayerNormParameterized(use_mean=False, elementwise_scale=True,
    #                        elementwise_shift=False) == RMSNorm with weight.
    var = jnp.mean(x * x, axis=-1, keepdims=True)
    return (x * jax.lax.rsqrt(var + eps)) * w


# ----------------------------------------------------------------------------
# Fully fused forward kernel: the whole (B*S)-token forward in one grid step.
# ----------------------------------------------------------------------------
def _granite_fwd_kernel(x_ref, cos_ref, sin_ref, bias_ref, ln_ref, ffln_ref,
                        wqkv_ref, wo_ref, wgu_ref, w2_ref, dec_ref, head_ref,
                        o_ref, *, nlayers, nheads, head_dim, eps, hpad):
    bf = jnp.bfloat16
    x = x_ref[...].astype(jnp.float32)              # (T, D) residual stream
    T, D = x.shape
    H, hd = nheads, head_dim
    hh = hd // 2

    # RoPE tables and causal bias broadcast over heads ONCE (hoisted out of the
    # layer loop; JAX does not CSE broadcast_in_dim).
    cosb = jnp.broadcast_to(cos_ref[...][None], (H, T, hd))     # [cos|cos]
    sinb = jnp.broadcast_to(sin_ref[...][None], (H, T, hd))     # [sin|sin]
    negb = jnp.broadcast_to(bias_ref[...][None], (H, T, T))     # block-diag causal

    def rot_half(t):
        # t is in per-head [evens | odds] basis -> rotate-half = [-odds | evens]
        return jnp.concatenate([-t[..., hh:], t[..., :hh]], axis=-1)

    for l in range(nlayers):                         # small nlayers -> unrolled
        # ---- attention sub-layer (attention_multiplier folded into Wq) -----
        h1 = _rmsnorm(x, ln_ref[l], eps).astype(bf)                  # (T, D)
        qkv = jnp.dot(h1, wqkv_ref[l],
                      preferred_element_type=jnp.float32)            # (T, 3D)
        # Split the lane-packed projections into heads: (H, T, hd).
        q = jnp.stack([qkv[:, i * hd:(i + 1) * hd] for i in range(H)], axis=0)
        k = jnp.stack([qkv[:, D + i * hd:D + (i + 1) * hd] for i in range(H)],
                      axis=0)
        v = jnp.stack([qkv[:, 2 * D + i * hd:2 * D + (i + 1) * hd]
                       for i in range(H)], axis=0)

        # Full-width RoPE in the [evens|odds] basis (linear, so the folded
        # attention_multiplier on q commutes with the rotation).
        qr = (q * cosb + rot_half(q) * sinb).astype(bf)
        kr = (k * cosb + rot_half(k) * sinb).astype(bf)

        scores = jnp.einsum("hqd,hkd->hqk", qr, kr,
                            preferred_element_type=jnp.float32) + negb
        m = jnp.max(scores, axis=-1, keepdims=True)
        e = jnp.exp(scores - m)
        p = e * pl.reciprocal(jnp.sum(e, axis=-1, keepdims=True), approx=True)
        ctx = jnp.einsum("hqk,hkd->hqd", p.astype(bf), v.astype(bf),
                         preferred_element_type=jnp.float32)          # (H, T, hd)

        # Lane-concat heads back to (T, D) and do ONE output projection
        # (residual_multiplier folded into Wo).
        ctx_flat = jnp.concatenate([ctx[i] for i in range(H)], axis=-1).astype(bf)
        attn = jnp.dot(ctx_flat, wo_ref[l], preferred_element_type=jnp.float32)
        x = x + attn

        # ---- gated MLP sub-layer (fused gate/up; hidden padded lane-dense) --
        h2 = _rmsnorm(x, ffln_ref[l], eps).astype(bf)
        gu = jnp.dot(h2, wgu_ref[l], preferred_element_type=jnp.float32)  # (T, 2*hpad)
        g = gu[:, :hpad]
        u = gu[:, hpad:]
        act = (jax.nn.silu(g) * u).astype(bf)
        ff = jnp.dot(act, w2_ref[l], preferred_element_type=jnp.float32)
        x = x + ff                                   # residual_mult folded in W2

    # ---- dec_norm + LM head (1/logits_scaling folded into head weight) ------
    hf = _rmsnorm(x, dec_ref[...], eps).astype(bf)
    o_ref[...] = jnp.dot(hf, head_ref[...], preferred_element_type=jnp.float32)


def granite_forward(x_flat, kp, cfg):
    """Single pallas_call for the whole Granite forward (post-embedding).

    x_flat: (B*S, D) bf16 token activations (batch folded into rows).
    Returns (B*S, V) f32 logits.
    """
    T, D = x_flat.shape
    V = kp["head_w"].shape[-1]
    hpad = kp["wgu"].shape[-1] // 2

    kern = functools.partial(_granite_fwd_kernel, nlayers=cfg.nlayers,
                             nheads=cfg.nheads, head_dim=cfg.head_dim,
                             eps=cfg.norm_eps, hpad=hpad)

    names = ("cos", "sin", "bias", "ln_w", "ffln_w", "wqkv", "wo",
             "wgu", "w2", "dec_w", "head_w")

    def resident(arr):   # full-array block, resident in VMEM (1-step grid)
        return pl.BlockSpec(arr.shape, lambda b, _n=arr.ndim: (0,) * _n)

    in_specs = [pl.BlockSpec((T, D), lambda b: (0, 0))]
    in_specs += [resident(kp[n]) for n in names]

    # Explicit VMEM budget from the actual resident footprint (weights + tables
    # + streamed activation + logits), with headroom for intermediates; clamped
    # so it fits every generation's physical VMEM (v7x: 64 MiB).
    resident_bytes = (int(x_flat.size) * x_flat.dtype.itemsize
                      + sum(int(kp[n].size) * kp[n].dtype.itemsize for n in names)
                      + T * V * 4)
    vmem_limit = int(min(max(4 * resident_bytes, 16 * 1024 * 1024),
                         48 * 1024 * 1024))

    return pl.pallas_call(
        kern,
        out_shape=jax.ShapeDtypeStruct((T, V), jnp.float32),
        grid=(1,),
        in_specs=in_specs,
        out_specs=pl.BlockSpec((T, V), lambda b: (0, 0)),
        compiler_params=pltpu.CompilerParams(
            dimension_semantics=("arbitrary",),
            vmem_limit_bytes=vmem_limit),
    )(x_flat, *[kp[n] for n in names])


# ----------------------------------------------------------------------------
# Deterministic synthetic parameters (shapes per Granite __init__)
# ----------------------------------------------------------------------------
def init_params(cfg, key):
    D, V = cfg.emb_dim, cfg.src_vocab_size
    hidden = cfg.hidden_dim
    n_per_layer = 9
    keys = list(jax.random.split(key, 3 + n_per_layer * cfg.nlayers))
    ki = iter(keys)

    emb = jax.random.normal(next(ki), (V, D), jnp.float32) * (D ** -0.5)
    emb = emb.at[cfg.pad_id].set(0.0)    # padding_idx row zeroed (nn.Embedding)

    layers = []
    for _ in range(cfg.nlayers):
        ln_w = 1.0 + 0.1 * jax.random.normal(next(ki), (1, D), jnp.float32)
        ffln_w = 1.0 + 0.1 * jax.random.normal(next(ki), (1, D), jnp.float32)
        wq = jax.random.normal(next(ki), (D, D), jnp.float32) * (D ** -0.5)
        wk = jax.random.normal(next(ki), (D, D), jnp.float32) * (D ** -0.5)
        wv = jax.random.normal(next(ki), (D, D), jnp.float32) * (D ** -0.5)
        wo = jax.random.normal(next(ki), (D, D), jnp.float32) * (D ** -0.5)
        wg = jax.random.normal(next(ki), (D, hidden), jnp.float32) * (D ** -0.5)
        w1 = jax.random.normal(next(ki), (D, hidden), jnp.float32) * (D ** -0.5)
        w2 = jax.random.normal(next(ki), (hidden, D), jnp.float32) * (hidden ** -0.5)
        layers.append(dict(ln_w=ln_w, ffln_w=ffln_w, wq=wq, wk=wk, wv=wv, wo=wo,
                           wg=wg, w1=w1, w2=w2))

    dec_w = 1.0 + 0.1 * jax.random.normal(next(ki), (1, D), jnp.float32)
    head_w = jax.random.normal(next(ki), (D, V), jnp.float32) * (
        1.0 / math.sqrt(math.sqrt(D * V)))
    return dict(emb=emb, layers=layers, dec_w=dec_w, head_w=head_w)


# ----------------------------------------------------------------------------
# Kernel-side parameter prep: RoPE column permutation, fused QKV / gate-up
# weights, scale folding, hidden padding, block-diagonal causal bias, bf16.
# ----------------------------------------------------------------------------
def prep_kernel_params(params, cfg, B, S):
    D, H, hd = cfg.emb_dim, cfg.nheads, cfg.head_dim
    hh = hd // 2
    hidden = cfg.hidden_dim
    hpad = ((hidden + 127) // 128) * 128          # 192 -> 256 (lane-dense MLP)
    T = B * S
    bf = jnp.bfloat16

    # RoPE tables in the per-head [evens | odds] basis, (T, hd) with positions
    # repeating per folded batch element.
    pos = jnp.arange(S, dtype=jnp.float32)
    inv_freq = 1.0 / (cfg.rope_theta **
                      (jnp.arange(0, hd, 2, dtype=jnp.float32) / hd))
    ang = pos[:, None] * inv_freq[None, :]                       # (S, hh)
    cos = jnp.concatenate([jnp.cos(ang), jnp.cos(ang)], axis=1)  # (S, hd)
    sin = jnp.concatenate([jnp.sin(ang), jnp.sin(ang)], axis=1)
    cos = jnp.tile(cos, (B, 1)).astype(jnp.float32)              # (T, hd)
    sin = jnp.tile(sin, (B, 1)).astype(jnp.float32)

    # Block-diagonal causal additive bias for the batch-folded rows.
    r = np.arange(T)
    ok = (r[:, None] >= r[None, :]) & ((r[:, None] // S) == (r[None, :] // S))
    bias = jnp.asarray(np.where(ok, 0.0, -1e30), dtype=jnp.float32)   # (T, T)

    # interleaved (even, odd) pairs -> [evens | odds] per head
    perm = np.concatenate([np.arange(0, hd, 2), np.arange(1, hd, 2)])

    def permute_heads(w):           # (D, D) -> per-head [evens|odds] columns
        return w.reshape(D, H, hd)[:, :, perm].reshape(D, D)

    ln_w, ffln_w, wqkv, wo, wgu, w2 = ([] for _ in range(6))
    for lp in params["layers"]:
        ln_w.append(lp["ln_w"])
        ffln_w.append(lp["ffln_w"])
        wqkv.append(jnp.concatenate(
            [permute_heads(lp["wq"]) * cfg.attention_multiplier,   # scale folded
             permute_heads(lp["wk"]),
             lp["wv"]], axis=1).astype(bf))                        # (D, 3D)
        wo.append((lp["wo"] * cfg.residual_multiplier).astype(bf))  # (D, D)
        wg_p = jnp.pad(lp["wg"], ((0, 0), (0, hpad - hidden)))
        w1_p = jnp.pad(lp["w1"], ((0, 0), (0, hpad - hidden)))
        wgu.append(jnp.concatenate([wg_p, w1_p], axis=1).astype(bf))  # (D, 2*hpad)
        w2.append((jnp.pad(lp["w2"], ((0, hpad - hidden), (0, 0)))
                   * cfg.residual_multiplier).astype(bf))             # (hpad, D)

    st = lambda xs: jnp.stack(xs, axis=0)
    return dict(
        cos=cos, sin=sin, bias=bias,
        ln_w=st(ln_w), ffln_w=st(ffln_w),
        wqkv=st(wqkv), wo=st(wo), wgu=st(wgu), w2=st(w2),
        dec_w=params["dec_w"],
        head_w=(params["head_w"] / cfg.logits_scaling).astype(bf))


# ----------------------------------------------------------------------------
# Pure-JAX reference (faithful to the PyTorch module: interleaved RoPE, SDPA)
# ----------------------------------------------------------------------------
def ref_forward(ids, params, cfg):
    B, S = ids.shape
    D, H, hd = cfg.emb_dim, cfg.nheads, cfg.head_dim
    hp = jax.lax.Precision.HIGHEST

    x = params["emb"][ids] * cfg.embedding_multiplier
    pos = jnp.arange(S, dtype=jnp.float32)
    inv_freq = 1.0 / (cfg.rope_theta ** (jnp.arange(0, hd, 2, dtype=jnp.float32) / hd))
    ang = pos[:, None] * inv_freq[None, :]
    cos, sin = jnp.cos(ang), jnp.sin(ang)

    def rope_interleaved(t):              # (B, S, H, hd)
        t = t.reshape(B, S, H, hd // 2, 2)
        t0, t1 = t[..., 0], t[..., 1]
        c = cos[None, :, None, :]
        s = sin[None, :, None, :]
        return jnp.stack([t0 * c - t1 * s, t0 * s + t1 * c], axis=-1).reshape(B, S, H, hd)

    def rms(x, w):
        var = jnp.mean(x * x, axis=-1, keepdims=True)
        return x * jax.lax.rsqrt(var + cfg.norm_eps) * w

    causal = jnp.tril(jnp.ones((S, S), dtype=bool))
    for lp in params["layers"]:
        h = rms(x, lp["ln_w"][0])
        q = jnp.dot(h, lp["wq"], precision=hp).reshape(B, S, H, hd)
        k = jnp.dot(h, lp["wk"], precision=hp).reshape(B, S, H, hd)
        v = jnp.dot(h, lp["wv"], precision=hp).reshape(B, S, H, hd)
        q, k = rope_interleaved(q), rope_interleaved(k)
        scores = jnp.einsum("bqhd,bkhd->bhqk", q, k, precision=hp) * cfg.attention_multiplier
        scores = jnp.where(causal[None, None], scores, -jnp.inf)
        p = jax.nn.softmax(scores, axis=-1)
        o = jnp.einsum("bhqk,bkhd->bqhd", p, v, precision=hp).reshape(B, S, D)
        x = x + cfg.residual_multiplier * jnp.dot(o, lp["wo"], precision=hp)
        h2 = rms(x, lp["ffln_w"][0])
        g = jnp.dot(h2, lp["wg"], precision=hp)
        u = jnp.dot(h2, lp["w1"], precision=hp)
        ff = jnp.dot(jax.nn.silu(g) * u, lp["w2"], precision=hp)
        x = x + cfg.residual_multiplier * ff
    x = rms(x, params["dec_w"][0])
    return jnp.dot(x, params["head_w"], precision=hp) / cfg.logits_scaling


# ----------------------------------------------------------------------------
# main
# ----------------------------------------------------------------------------
if __name__ == "__main__":
    cfg = Cfg()
    key = jax.random.PRNGKey(0)
    pkey, ikey = jax.random.split(key)
    params = init_params(cfg, pkey)

    B, S = 2, 8
    ids = jax.random.randint(ikey, (B, S), 0, cfg.src_vocab_size - 1, dtype=jnp.int32)

    kp = prep_kernel_params(params, cfg, B, S)

    # glue: embedding gather + embedding_multiplier kept outside the kernel.
    # TODO(synk): in-kernel DMA gather for the embedding table.
    x = params["emb"][ids] * cfg.embedding_multiplier            # (B, S, D) f32
    x_flat = x.reshape(B * S, cfg.emb_dim).astype(jnp.bfloat16)  # bf16 stream-in

    logits_flat = granite_forward(x_flat, kp, cfg)
    logits = logits_flat.reshape(B, S, cfg.src_vocab_size)
    logits = jax.block_until_ready(logits)

    # --- verify against pure-JAX reference ---
    ref = ref_forward(ids, params, cfg)
    assert logits.shape == (B, S, cfg.src_vocab_size)
    assert bool(jnp.all(jnp.isfinite(logits)))
    np.testing.assert_allclose(np.asarray(logits), np.asarray(ref),
                               rtol=4e-2, atol=4e-2)
    print("KERNEL_OK")
</pallas_src>

<mosaic_0001>
module attributes {stable_mosaic.version = 11 : i64} {
  func.func @_granite_fwd_kernel(%arg0: i32, %arg1: memref<16x64xbf16, #tpu.memory_space<vmem>>, %arg2: memref<16x16xf32, #tpu.memory_space<vmem>>, %arg3: memref<16x16xf32, #tpu.memory_space<vmem>>, %arg4: memref<16x16xf32, #tpu.memory_space<vmem>>, %arg5: memref<2x1x64xf32, #tpu.memory_space<vmem>>, %arg6: memref<2x1x64xf32, #tpu.memory_space<vmem>>, %arg7: memref<2x64x192xbf16, #tpu.memory_space<vmem>>, %arg8: memref<2x64x64xbf16, #tpu.memory_space<vmem>>, %arg9: memref<2x64x512xbf16, #tpu.memory_space<vmem>>, %arg10: memref<2x256x64xbf16, #tpu.memory_space<vmem>>, %arg11: memref<1x64xf32, #tpu.memory_space<vmem>>, %arg12: memref<64x256xbf16, #tpu.memory_space<vmem>>, %arg13: memref<16x256xf32, #tpu.memory_space<vmem>>) attributes {dimension_semantics = [#tpu.dimension_semantics<arbitrary>], iteration_bounds = array<i64: 1>, scalar_prefetch = 0 : i64, scratch_operands = 0 : i64, tpu.core_type = #tpu.core_type<tc>, window_params = [{pipeline_mode = #tpu.pipeline_mode<synchronous>, transform_indices = @transform_0, window_bounds = array<i64: 16, 64>}, {pipeline_mode = #tpu.pipeline_mode<synchronous>, transform_indices = @transform_1, window_bounds = array<i64: 16, 16>}, {pipeline_mode = #tpu.pipeline_mode<synchronous>, transform_indices = @transform_2, window_bounds = array<i64: 16, 16>}, {pipeline_mode = #tpu.pipeline_mode<synchronous>, transform_indices = @transform_3, window_bounds = array<i64: 16, 16>}, {pipeline_mode = #tpu.pipeline_mode<synchronous>, transform_indices = @transform_4, window_bounds = array<i64: 2, 1, 64>}, {pipeline_mode = #tpu.pipeline_mode<synchronous>, transform_indices = @transform_5, window_bounds = array<i64: 2, 1, 64>}, {pipeline_mode = #tpu.pipeline_mode<synchronous>, transform_indices = @transform_6, window_bounds = array<i64: 2, 64, 192>}, {pipeline_mode = #tpu.pipeline_mode<synchronous>, transform_indices = @transform_7, window_bounds = array<i64: 2, 64, 64>}, {pipeline_mode = #tpu.pipeline_mode<synchronous>, transform_indices = @transform_8, window_bounds = array<i64: 2, 64, 512>}, {pipeline_mode = #tpu.pipeline_mode<synchronous>, transform_indices = @transform_9, window_bounds = array<i64: 2, 256, 64>}, {pipeline_mode = #tpu.pipeline_mode<synchronous>, transform_indices = @transform_10, window_bounds = array<i64: 1, 64>}, {pipeline_mode = #tpu.pipeline_mode<synchronous>, transform_indices = @transform_11, window_bounds = array<i64: 64, 256>}, {pipeline_mode = #tpu.pipeline_mode<synchronous>, transform_indices = @transform_12, window_bounds = array<i64: 16, 256>}]} {
    %c0 = arith.constant 0 : index
    %c0_0 = arith.constant 0 : index
    %0 = vector.load %arg1[%c0, %c0_0] : memref<16x64xbf16, #tpu.memory_space<vmem>>, vector<16x64xbf16>
    %1 = arith.extf %0 : vector<16x64xbf16> to vector<16x64xf32>
    %c0_1 = arith.constant 0 : index
    %c0_2 = arith.constant 0 : index
    %2 = vector.load %arg2[%c0_1, %c0_2] : memref<16x16xf32, #tpu.memory_space<vmem>>, vector<16x16xf32>
    %3 = vector.shape_cast %2 : vector<16x16xf32> to vector<1x16x16xf32>
    %4 = vector.shape_cast %3 : vector<1x16x16xf32> to vector<1x16x16xf32>
    %5 = vector.broadcast %4 : vector<1x16x16xf32> to vector<4x16x16xf32>
    %c0_3 = arith.constant 0 : index
    %c0_4 = arith.constant 0 : index
    %6 = vector.load %arg3[%c0_3, %c0_4] : memref<16x16xf32, #tpu.memory_space<vmem>>, vector<16x16xf32>
    %7 = vector.shape_cast %6 : vector<16x16xf32> to vector<1x16x16xf32>
    %8 = vector.shape_cast %7 : vector<1x16x16xf32> to vector<1x16x16xf32>
    %9 = vector.broadcast %8 : vector<1x16x16xf32> to vector<4x16x16xf32>
    %c0_5 = arith.constant 0 : index
    %c0_6 = arith.constant 0 : index
    %10 = vector.load %arg4[%c0_5, %c0_6] : memref<16x16xf32, #tpu.memory_space<vmem>>, vector<16x16xf32>
    %11 = vector.shape_cast %10 : vector<16x16xf32> to vector<1x16x16xf32>
    %12 = vector.shape_cast %11 : vector<1x16x16xf32> to vector<1x16x16xf32>
    %13 = vector.broadcast %12 : vector<1x16x16xf32> to vector<4x16x16xf32>
    %c0_7 = arith.constant 0 : index
    %c0_8 = arith.constant 0 : index
    %c0_9 = arith.constant 0 : index
    %14 = vector.load %arg5[%c0_7, %c0_8, %c0_9] : memref<2x1x64xf32, #tpu.memory_space<vmem>>, vector<1x1x64xf32>
    %15 = vector.shape_cast %14 : vector<1x1x64xf32> to vector<1x64xf32>
    %16 = arith.mulf %1, %1 : vector<16x64xf32>
    %cst = arith.constant dense<0.000000e+00> : vector<16xf32>
    %17 = vector.multi_reduction <add>, %16, %cst [1] : vector<16x64xf32> to vector<16xf32>
    %18 = vector.shape_cast %17 : vector<16xf32> to vector<16x1xf32>
    %cst_10 = arith.constant 6.400000e+01 : f32
    %19 = vector.broadcast %cst_10 : f32 to vector<16x1xf32>
    %20 = arith.divf %18, %19 : vector<16x1xf32>
    %cst_11 = arith.constant 9.99999974E-6 : f32
    %21 = vector.broadcast %cst_11 : f32 to vector<16x1xf32>
    %22 = arith.addf %20, %21 : vector<16x1xf32>
    %23 = math.rsqrt %22 : vector<16x1xf32>
    %24 = vector.broadcast %23 : vector<16x1xf32> to vector<16x64xf32>
    %25 = arith.mulf %1, %24 : vector<16x64xf32>
    %26 = vector.broadcast %15 : vector<1x64xf32> to vector<16x64xf32>
    %27 = arith.mulf %25, %26 : vector<16x64xf32>
    %28 = arith.truncf %27 : vector<16x64xf32> to vector<16x64xbf16>
    %c0_12 = arith.constant 0 : index
    %c0_13 = arith.constant 0 : index
    %c0_14 = arith.constant 0 : index
    %29 = vector.load %arg7[%c0_12, %c0_13, %c0_14] : memref<2x64x192xbf16, #tpu.memory_space<vmem>>, vector<1x64x192xbf16>
    %30 = vector.shape_cast %29 : vector<1x64x192xbf16> to vector<64x192xbf16>
    %cst_15 = arith.constant dense<0.000000e+00> : vector<16x192xf32>
    %31 = tpu.matmul %28, %30, %cst_15 {dimension_numbers = #tpu.dot_dimension_numbers<[1], [0], [0], [1], [0, 0, 1, 1], [], []>} : vector<16x64xbf16>, vector<64x192xbf16>, vector<16x192xf32> -> vector<16x192xf32>
    %32 = vector.extract_strided_slice %31 {offsets = [0, 0], sizes = [16, 16], strides = [1, 1]} : vector<16x192xf32> to vector<16x16xf32>
    %33 = vector.extract_strided_slice %31 {offsets = [0, 16], sizes = [16, 16], strides = [1, 1]} : vector<16x192xf32> to vector<16x16xf32>
    %34 = vector.extract_strided_slice %31 {offsets = [0, 32], sizes = [16, 16], strides = [1, 1]} : vector<16x192xf32> to vector<16x16xf32>
    %35 = vector.extract_strided_slice %31 {offsets = [0, 48], sizes = [16, 16], strides = [1, 1]} : vector<16x192xf32> to vector<16x16xf32>
    %36 = vector.shape_cast %32 : vector<16x16xf32> to vector<1x16x16xf32>
    %37 = vector.shape_cast %33 : vector<16x16xf32> to vector<1x16x16xf32>
    %38 = vector.shape_cast %34 : vector<16x16xf32> to vector<1x16x16xf32>
    %39 = vector.shape_cast %35 : vector<16x16xf32> to vector<1x16x16xf32>
    %40 = tpu.concatenate %36, %37, %38, %39 in 0 : vector<1x16x16xf32>, vector<1x16x16xf32>, vector<1x16x16xf32>, vector<1x16x16xf32> -> vector<4x16x16xf32>
    %41 = vector.extract_strided_slice %31 {offsets = [0, 64], sizes = [16, 16], strides = [1, 1]} : vector<16x192xf32> to vector<16x16xf32>
    %42 = vector.extract_strided_slice %31 {offsets = [0, 80], sizes = [16, 16], strides = [1, 1]} : vector<16x192xf32> to vector<16x16xf32>
    %43 = vector.extract_strided_slice %31 {offsets = [0, 96], sizes = [16, 16], strides = [1, 1]} : vector<16x192xf32> to vector<16x16xf32>
    %44 = vector.extract_strided_slice %31 {offsets = [0, 112], sizes = [16, 16], strides = [1, 1]} : vector<16x192xf32> to vector<16x16xf32>
    %45 = vector.shape_cast %41 : vector<16x16xf32> to vector<1x16x16xf32>
    %46 = vector.shape_cast %42 : vector<16x16xf32> to vector<1x16x16xf32>
    %47 = vector.shape_cast %43 : vector<16x16xf32> to vector<1x16x16xf32>
    %48 = vector.shape_cast %44 : vector<16x16xf32> to vector<1x16x16xf32>
    %49 = tpu.concatenate %45, %46, %47, %48 in 0 : vector<1x16x16xf32>, vector<1x16x16xf32>, vector<1x16x16xf32>, vector<1x16x16xf32> -> vector<4x16x16xf32>
    %50 = vector.extract_strided_slice %31 {offsets = [0, 128], sizes = [16, 16], strides = [1, 1]} : vector<16x192xf32> to vector<16x16xf32>
    %51 = vector.extract_strided_slice %31 {offsets = [0, 144], sizes = [16, 16], strides = [1, 1]} : vector<16x192xf32> to vector<16x16xf32>
    %52 = vector.extract_strided_slice %31 {offsets = [0, 160], sizes = [16, 16], strides = [1, 1]} : vector<16x192xf32> to vector<16x16xf32>
    %53 = vector.extract_strided_slice %31 {offsets = [0, 176], sizes = [16, 16], strides = [1, 1]} : vector<16x192xf32> to vector<16x16xf32>
    %54 = vector.shape_cast %50 : vector<16x16xf32> to vector<1x16x16xf32>
    %55 = vector.shape_cast %51 : vector<16x16xf32> to vector<1x16x16xf32>
    %56 = vector.shape_cast %52 : vector<16x16xf32> to vector<1x16x16xf32>
    %57 = vector.shape_cast %53 : vector<16x16xf32> to vector<1x16x16xf32>
    %58 = tpu.concatenate %54, %55, %56, %57 in 0 : vector<1x16x16xf32>, vector<1x16x16xf32>, vector<1x16x16xf32>, vector<1x16x16xf32> -> vector<4x16x16xf32>
    %59 = arith.mulf %40, %5 : vector<4x16x16xf32>
    %60 = vector.extract_strided_slice %40 {offsets = [0, 0, 8], sizes = [4, 16, 8], strides = [1, 1, 1]} : vector<4x16x16xf32> to vector<4x16x8xf32>
    %cst_16 = arith.constant 0.000000e+00 : f32
    %61 = vector.broadcast %cst_16 : f32 to vector<4x16x8xf32>
    %62 = arith.subf %61, %60 : vector<4x16x8xf32>
    %63 = vector.extract_strided_slice %40 {offsets = [0, 0, 0], sizes = [4, 16, 8], strides = [1, 1, 1]} : vector<4x16x16xf32> to vector<4x16x8xf32>
    %64 = tpu.concatenate %62, %63 in 2 : vector<4x16x8xf32>, vector<4x16x8xf32> -> vector<4x16x16xf32>
    %65 = arith.mulf %64, %9 : vector<4x16x16xf32>
    %66 = arith.addf %59, %65 : vector<4x16x16xf32>
    %67 = arith.truncf %66 : vector<4x16x16xf32> to vector<4x16x16xbf16>
    %68 = arith.mulf %49, %5 : vector<4x16x16xf32>
    %69 = vector.extract_strided_slice %49 {offsets = [0, 0, 8], sizes = [4, 16, 8], strides = [1, 1, 1]} : vector<4x16x16xf32> to vector<4x16x8xf32>
    %cst_17 = arith.constant 0.000000e+00 : f32
    %70 = vector.broadcast %cst_17 : f32 to vector<4x16x8xf32>
    %71 = arith.subf %70, %69 : vector<4x16x8xf32>
    %72 = vector.extract_strided_slice %49 {offsets = [0, 0, 0], sizes = [4, 16, 8], strides = [1, 1, 1]} : vector<4x16x16xf32> to vector<4x16x8xf32>
    %73 = tpu.concatenate %71, %72 in 2 : vector<4x16x8xf32>, vector<4x16x8xf32> -> vector<4x16x16xf32>
    %74 = arith.mulf %73, %9 : vector<4x16x16xf32>
    %75 = arith.addf %68, %74 : vector<4x16x16xf32>
    %76 = arith.truncf %75 : vector<4x16x16xf32> to vector<4x16x16xbf16>
    "tpu.trace_start"() <{level = 10 : i32, message = "hqd,hkd->hqk"}> : () -> ()
    %cst_18 = arith.constant dense<0.000000e+00> : vector<4x16x16xf32>
    %77 = tpu.matmul %67, %76, %cst_18 {dimension_numbers = #tpu.dot_dimension_numbers<[2], [2], [1], [1], [0, 0, 0, 1, 1, 1], [0], [0]>} : vector<4x16x16xbf16>, vector<4x16x16xbf16>, vector<4x16x16xf32> -> vector<4x16x16xf32>
    "tpu.trace_stop"() : () -> ()
    %78 = arith.addf %77, %13 : vector<4x16x16xf32>
    %cst_19 = arith.constant dense<0xFF800000> : vector<4x16xf32>
    %79 = vector.multi_reduction <maximumf>, %78, %cst_19 [2] : vector<4x16x16xf32> to vector<4x16xf32>
    %80 = vector.shape_cast %79 : vector<4x16xf32> to vector<4x16x1xf32>
    %81 = vector.broadcast %80 : vector<4x16x1xf32> to vector<4x16x16xf32>
    %82 = arith.subf %78, %81 : vector<4x16x16xf32>
    %83 = math.exp %82 : vector<4x16x16xf32>
    %cst_20 = arith.constant dense<0.000000e+00> : vector<4x16xf32>
    %84 = vector.multi_reduction <add>, %83, %cst_20 [2] : vector<4x16x16xf32> to vector<4x16xf32>
    %85 = vector.shape_cast %84 : vector<4x16xf32> to vector<4x16x1xf32>
    %86 = tpu.reciprocal %85 {approx = true} : vector<4x16x1xf32> -> vector<4x16x1xf32>
    %87 = vector.broadcast %86 : vector<4x16x1xf32> to vector<4x16x16xf32>
    %88 = arith.mulf %83, %87 : vector<4x16x16xf32>
    %89 = arith.truncf %88 : vector<4x16x16xf32> to vector<4x16x16xbf16>
    %90 = arith.truncf %58 : vector<4x16x16xf32> to vector<4x16x16xbf16>
    "tpu.trace_start"() <{level = 10 : i32, message = "hqk,hkd->hqd"}> : () -> ()
    %cst_21 = arith.constant dense<0.000000e+00> : vector<4x16x16xf32>
    %91 = tpu.matmul %89, %90, %cst_21 {dimension_numbers = #tpu.dot_dimension_numbers<[2], [1], [1], [2], [0, 0, 0, 1, 1, 2], [0], [0]>} : vector<4x16x16xbf16>, vector<4x16x16xbf16>, vector<4x16x16xf32> -> vector<4x16x16xf32>
    "tpu.trace_stop"() : () -> ()
    %92 = vector.extract_strided_slice %91 {offsets = [0, 0, 0], sizes = [1, 16, 16], strides = [1, 1, 1]} : vector<4x16x16xf32> to vector<1x16x16xf32>
    %93 = vector.shape_cast %92 : vector<1x16x16xf32> to vector<16x16xf32>
    %94 = vector.extract_strided_slice %91 {offsets = [1, 0, 0], sizes = [1, 16, 16], strides = [1, 1, 1]} : vector<4x16x16xf32> to vector<1x16x16xf32>
    %95 = vector.shape_cast %94 : vector<1x16x16xf32> to vector<16x16xf32>
    %96 = vector.extract_strided_slice %91 {offsets = [2, 0, 0], sizes = [1, 16, 16], strides = [1, 1, 1]} : vector<4x16x16xf32> to vector<1x16x16xf32>
    %97 = vector.shape_cast %96 : vector<1x16x16xf32> to vector<16x16xf32>
    %98 = vector.extract_strided_slice %91 {offsets = [3, 0, 0], sizes = [1, 16, 16], strides = [1, 1, 1]} : vector<4x16x16xf32> to vector<1x16x16xf32>
    %99 = vector.shape_cast %98 : vector<1x16x16xf32> to vector<16x16xf32>
    %100 = tpu.concatenate %93, %95, %97, %99 in 1 : vector<16x16xf32>, vector<16x16xf32>, vector<16x16xf32>, vector<16x16xf32> -> vector<16x64xf32>
    %101 = arith.truncf %100 : vector<16x64xf32> to vector<16x64xbf16>
    %c0_22 = arith.constant 0 : index
    %c0_23 = arith.constant 0 : index
    %c0_24 = arith.constant 0 : index
    %102 = vector.load %arg8[%c0_22, %c0_23, %c0_24] : memref<2x64x64xbf16, #tpu.memory_space<vmem>>, vector<1x64x64xbf16>
    %103 = vector.shape_cast %102 : vector<1x64x64xbf16> to vector<64x64xbf16>
    %cst_25 = arith.constant dense<0.000000e+00> : vector<16x64xf32>
    %104 = tpu.matmul %101, %103, %cst_25 {dimension_numbers = #tpu.dot_dimension_numbers<[1], [0], [0], [1], [0, 0, 1, 1], [], []>} : vector<16x64xbf16>, vector<64x64xbf16>, vector<16x64xf32> -> vector<16x64xf32>
    %105 = arith.addf %1, %104 : vector<16x64xf32>
    %c0_26 = arith.constant 0 : index
    %c0_27 = arith.constant 0 : index
    %c0_28 = arith.constant 0 : index
    %106 = vector.load %arg6[%c0_26, %c0_27, %c0_28] : memref<2x1x64xf32, #tpu.memory_space<vmem>>, vector<1x1x64xf32>
    %107 = vector.shape_cast %106 : vector<1x1x64xf32> to vector<1x64xf32>
    %108 = arith.mulf %105, %105 : vector<16x64xf32>
    %cst_29 = arith.constant dense<0.000000e+00> : vector<16xf32>
    %109 = vector.multi_reduction <add>, %108, %cst_29 [1] : vector<16x64xf32> to vector<16xf32>
    %110 = vector.shape_cast %109 : vector<16xf32> to vector<16x1xf32>
    %cst_30 = arith.constant 6.400000e+01 : f32
    %111 = vector.broadcast %cst_30 : f32 to vector<16x1xf32>
    %112 = arith.divf %110, %111 : vector<16x1xf32>
    %cst_31 = arith.constant 9.99999974E-6 : f32
    %113 = vector.broadcast %cst_31 : f32 to vector<16x1xf32>
    %114 = arith.addf %112, %113 : vector<16x1xf32>
    %115 = math.rsqrt %114 : vector<16x1xf32>
    %116 = vector.broadcast %115 : vector<16x1xf32> to vector<16x64xf32>
    %117 = arith.mulf %105, %116 : vector<16x64xf32>
    %118 = vector.broadcast %107 : vector<1x64xf32> to vector<16x64xf32>
    %119 = arith.mulf %117, %118 : vector<16x64xf32>
    %120 = arith.truncf %119 : vector<16x64xf32> to vector<16x64xbf16>
    %c0_32 = arith.constant 0 : index
    %c0_33 = arith.constant 0 : index
    %c0_34 = arith.constant 0 : index
    %121 = vector.load %arg9[%c0_32, %c0_33, %c0_34] : memref<2x64x512xbf16, #tpu.memory_space<vmem>>, vector<1x64x512xbf16>
    %122 = vector.shape_cast %121 : vector<1x64x512xbf16> to vector<64x512xbf16>
    %cst_35 = arith.constant dense<0.000000e+00> : vector<16x512xf32>
    %123 = tpu.matmul %120, %122, %cst_35 {dimension_numbers = #tpu.dot_dimension_numbers<[1], [0], [0], [1], [0, 0, 1, 1], [], []>} : vector<16x64xbf16>, vector<64x512xbf16>, vector<16x512xf32> -> vector<16x512xf32>
    %124 = vector.extract_strided_slice %123 {offsets = [0, 0], sizes = [16, 256], strides = [1, 1]} : vector<16x512xf32> to vector<16x256xf32>
    %125 = vector.extract_strided_slice %123 {offsets = [0, 256], sizes = [16, 256], strides = [1, 1]} : vector<16x512xf32> to vector<16x256xf32>
    %126 = arith.negf %124 : vector<16x256xf32>
    %127 = math.exp %126 : vector<16x256xf32>
    %cst_36 = arith.constant 1.000000e+00 : f32
    %128 = vector.broadcast %cst_36 : f32 to vector<16x256xf32>
    %129 = arith.addf %128, %127 : vector<16x256xf32>
    %130 = arith.divf %128, %129 : vector<16x256xf32>
    %131 = arith.mulf %124, %130 : vector<16x256xf32>
    %132 = arith.mulf %131, %125 : vector<16x256xf32>
    %133 = arith.truncf %132 : vector<16x256xf32> to vector<16x256xbf16>
    %c0_37 = arith.constant 0 : index
    %c0_38 = arith.constant 0 : index
    %c0_39 = arith.constant 0 : index
    %134 = vector.load %arg10[%c0_37, %c0_38, %c0_39] : memref<2x256x64xbf16, #tpu.memory_space<vmem>>, vector<1x256x64xbf16>
    %135 = vector.shape_cast %134 : vector<1x256x64xbf16> to vector<256x64xbf16>
    %cst_40 = arith.constant dense<0.000000e+00> : vector<16x64xf32>
    %136 = tpu.matmul %133, %135, %cst_40 {dimension_numbers = #tpu.dot_dimension_numbers<[1], [0], [0], [1], [0, 0, 1, 1], [], []>} : vector<16x256xbf16>, vector<256x64xbf16>, vector<16x64xf32> -> vector<16x64xf32>
    %137 = arith.addf %105, %136 : vector<16x64xf32>
    %c1 = arith.constant 1 : index
    %c0_41 = arith.constant 0 : index
    %c0_42 = arith.constant 0 : index
    %138 = vector.load %arg5[%c1, %c0_41, %c0_42] : memref<2x1x64xf32, #tpu.memory_space<vmem>>, vector<1x1x64xf32>
    %139 = vector.shape_cast %138 : vector<1x1x64xf32> to vector<1x64xf32>
    %140 = arith.mulf %137, %137 : vector<16x64xf32>
    %cst_43 = arith.constant dense<0.000000e+00> : vector<16xf32>
    %141 = vector.multi_reduction <add>, %140, %cst_43 [1] : vector<16x64xf32> to vector<16xf32>
    %142 = vector.shape_cast %141 : vector<16xf32> to vector<16x1xf32>
    %cst_44 = arith.constant 6.400000e+01 : f32
    %143 = vector.broadcast %cst_44 : f32 to vector<16x1xf32>
    %144 = arith.divf %142, %143 : vector<16x1xf32>
    %cst_45 = arith.constant 9.99999974E-6 : f32
    %145 = vector.broadcast %cst_45 : f32 to vector<16x1xf32>
    %146 = arith.addf %144, %145 : vector<16x1xf32>
    %147 = math.rsqrt %146 : vector<16x1xf32>
    %148 = vector.broadcast %147 : vector<16x1xf32> to vector<16x64xf32>
    %149 = arith.mulf %137, %148 : vector<16x64xf32>
    %150 = vector.broadcast %139 : vector<1x64xf32> to vector<16x64xf32>
    %151 = arith.mulf %149, %150 : vector<16x64xf32>
    %152 = arith.truncf %151 : vector<16x64xf32> to vector<16x64xbf16>
    %c1_46 = arith.constant 1 : index
    %c0_47 = arith.constant 0 : index
    %c0_48 = arith.constant 0 : index
    %153 = vector.load %arg7[%c1_46, %c0_47, %c0_48] : memref<2x64x192xbf16, #tpu.memory_space<vmem>>, vector<1x64x192xbf16>
    %154 = vector.shape_cast %153 : vector<1x64x192xbf16> to vector<64x192xbf16>
    %cst_49 = arith.constant dense<0.000000e+00> : vector<16x192xf32>
    %155 = tpu.matmul %152, %154, %cst_49 {dimension_numbers = #tpu.dot_dimension_numbers<[1], [0], [0], [1], [0, 0, 1, 1], [], []>} : vector<16x64xbf16>, vector<64x192xbf16>, vector<16x192xf32> -> vector<16x192xf32>
    %156 = vector.extract_strided_slice %155 {offsets = [0, 0], sizes = [16, 16], strides = [1, 1]} : vector<16x192xf32> to vector<16x16xf32>
    %157 = vector.extract_strided_slice %155 {offsets = [0, 16], sizes = [16, 16], strides = [1, 1]} : vector<16x192xf32> to vector<16x16xf32>
    %158 = vector.extract_strided_slice %155 {offsets = [0, 32], sizes = [16, 16], strides = [1, 1]} : vector<16x192xf32> to vector<16x16xf32>
    %159 = vector.extract_strided_slice %155 {offsets = [0, 48], sizes = [16, 16], strides = [1, 1]} : vector<16x192xf32> to vector<16x16xf32>
    %160 = vector.shape_cast %156 : vector<16x16xf32> to vector<1x16x16xf32>
    %161 = vector.shape_cast %157 : vector<16x16xf32> to vector<1x16x16xf32>
    %162 = vector.shape_cast %158 : vector<16x16xf32> to vector<1x16x16xf32>
    %163 = vector.shape_cast %159 : vector<16x16xf32> to vector<1x16x16xf32>
    %164 = tpu.concatenate %160, %161, %162, %163 in 0 : vector<1x16x16xf32>, vector<1x16x16xf32>, vector<1x16x16xf32>, vector<1x16x16xf32> -> vector<4x16x16xf32>
    %165 = vector.extract_strided_slice %155 {offsets = [0, 64], sizes = [16, 16], strides = [1, 1]} : vector<16x192xf32> to vector<16x16xf32>
    %166 = vector.extract_strided_slice %155 {offsets = [0, 80], sizes = [16, 16], strides = [1, 1]} : vector<16x192xf32> to vector<16x16xf32>
    %167 = vector.extract_strided_slice %155 {offsets = [0, 96], sizes = [16, 16], strides = [1, 1]} : vector<16x192xf32> to vector<16x16xf32>
    %168 = vector.extract_strided_slice %155 {offsets = [0, 112], sizes = [16, 16], strides = [1, 1]} : vector<16x192xf32> to vector<16x16xf32>
    %169 = vector.shape_cast %165 : vector<16x16xf32> to vector<1x16x16xf32>
    %170 = vector.shape_cast %166 : vector<16x16xf32> to vector<1x16x16xf32>
    %171 = vector.shape_cast %167 : vector<16x16xf32> to vector<1x16x16xf32>
    %172 = vector.shape_cast %168 : vector<16x16xf32> to vector<1x16x16xf32>
    %173 = tpu.concatenate %169, %170, %171, %172 in 0 : vector<1x16x16xf32>, vector<1x16x16xf32>, vector<1x16x16xf32>, vector<1x16x16xf32> -> vector<4x16x16xf32>
    %174 = vector.extract_strided_slice %155 {offsets = [0, 128], sizes = [16, 16], strides = [1, 1]} : vector<16x192xf32> to vector<16x16xf32>
    %175 = vector.extract_strided_slice %155 {offsets = [0, 144], sizes = [16, 16], strides = [1, 1]} : vector<16x192xf32> to vector<16x16xf32>
    %176 = vector.extract_strided_slice %155 {offsets = [0, 160], sizes = [16, 16], strides = [1, 1]} : vector<16x192xf32> to vector<16x16xf32>
    %177 = vector.extract_strided_slice %155 {offsets = [0, 176], sizes = [16, 16], strides = [1, 1]} : vector<16x192xf32> to vector<16x16xf32>
    %178 = vector.shape_cast %174 : vector<16x16xf32> to vector<1x16x16xf32>
    %179 = vector.shape_cast %175 : vector<16x16xf32> to vector<1x16x16xf32>
    %180 = vector.shape_cast %176 : vector<16x16xf32> to vector<1x16x16xf32>
    %181 = vector.shape_cast %177 : vector<16x16xf32> to vector<1x16x16xf32>
    %182 = tpu.concatenate %178, %179, %180, %181 in 0 : vector<1x16x16xf32>, vector<1x16x16xf32>, vector<1x16x16xf32>, vector<1x16x16xf32> -> vector<4x16x16xf32>
    %183 = arith.mulf %164, %5 : vector<4x16x16xf32>
    %184 = vector.extract_strided_slice %164 {offsets = [0, 0, 8], sizes = [4, 16, 8], strides = [1, 1, 1]} : vector<4x16x16xf32> to vector<4x16x8xf32>
    %cst_50 = arith.constant 0.000000e+00 : f32
    %185 = vector.broadcast %cst_50 : f32 to vector<4x16x8xf32>
    %186 = arith.subf %185, %184 : vector<4x16x8xf32>
    %187 = vector.extract_strided_slice %164 {offsets = [0, 0, 0], sizes = [4, 16, 8], strides = [1, 1, 1]} : vector<4x16x16xf32> to vector<4x16x8xf32>
    %188 = tpu.concatenate %186, %187 in 2 : vector<4x16x8xf32>, vector<4x16x8xf32> -> vector<4x16x16xf32>
    %189 = arith.mulf %188, %9 : vector<4x16x16xf32>
    %190 = arith.addf %183, %189 : vector<4x16x16xf32>
    %191 = arith.truncf %190 : vector<4x16x16xf32> to vector<4x16x16xbf16>
    %192 = arith.mulf %173, %5 : vector<4x16x16xf32>
    %193 = vector.extract_strided_slice %173 {offsets = [0, 0, 8], sizes = [4, 16, 8], strides = [1, 1, 1]} : vector<4x16x16xf32> to vector<4x16x8xf32>
    %cst_51 = arith.constant 0.000000e+00 : f32
    %194 = vector.broadcast %cst_51 : f32 to vector<4x16x8xf32>
    %195 = arith.subf %194, %193 : vector<4x16x8xf32>
    %196 = vector.extract_strided_slice %173 {offsets = [0, 0, 0], sizes = [4, 16, 8], strides = [1, 1, 1]} : vector<4x16x16xf32> to vector<4x16x8xf32>
    %197 = tpu.concatenate %195, %196 in 2 : vector<4x16x8xf32>, vector<4x16x8xf32> -> vector<4x16x16xf32>
    %198 = arith.mulf %197, %9 : vector<4x16x16xf32>
    %199 = arith.addf %192, %198 : vector<4x16x16xf32>
    %200 = arith.truncf %199 : vector<4x16x16xf32> to vector<4x16x16xbf16>
    "tpu.trace_start"() <{level = 10 : i32, message = "hqd,hkd->hqk"}> : () -> ()
    %cst_52 = arith.constant dense<0.000000e+00> : vector<4x16x16xf32>
    %201 = tpu.matmul %191, %200, %cst_52 {dimension_numbers = #tpu.dot_dimension_numbers<[2], [2], [1], [1], [0, 0, 0, 1, 1, 1], [0], [0]>} : vector<4x16x16xbf16>, vector<4x16x16xbf16>, vector<4x16x16xf32> -> vector<4x16x16xf32>
    "tpu.trace_stop"() : () -> ()
    %202 = arith.addf %201, %13 : vector<4x16x16xf32>
    %cst_53 = arith.constant dense<0xFF800000> : vector<4x16xf32>
    %203 = vector.multi_reduction <maximumf>, %202, %cst_53 [2] : vector<4x16x16xf32> to vector<4x16xf32>
    %204 = vector.shape_cast %203 : vector<4x16xf32> to vector<4x16x1xf32>
    %205 = vector.broadcast %204 : vector<4x16x1xf32> to vector<4x16x16xf32>
    %206 = arith.subf %202, %205 : vector<4x16x16xf32>
    %207 = math.exp %206 : vector<4x16x16xf32>
    %cst_54 = arith.constant dense<0.000000e+00> : vector<4x16xf32>
    %208 = vector.multi_reduction <add>, %207, %cst_54 [2] : vector<4x16x16xf32> to vector<4x16xf32>
    %209 = vector.shape_cast %208 : vector<4x16xf32> to vector<4x16x1xf32>
    %210 = tpu.reciprocal %209 {approx = true} : vector<4x16x1xf32> -> vector<4x16x1xf32>
    %211 = vector.broadcast %210 : vector<4x16x1xf32> to vector<4x16x16xf32>
    %212 = arith.mulf %207, %211 : vector<4x16x16xf32>
    %213 = arith.truncf %212 : vector<4x16x16xf32> to vector<4x16x16xbf16>
    %214 = arith.truncf %182 : vector<4x16x16xf32> to vector<4x16x16xbf16>
    "tpu.trace_start"() <{level = 10 : i32, message = "hqk,hkd->hqd"}> : () -> ()
    %cst_55 = arith.constant dense<0.000000e+00> : vector<4x16x16xf32>
    %215 = tpu.matmul %213, %214, %cst_55 {dimension_numbers = #tpu.dot_dimension_numbers<[2], [1], [1], [2], [0, 0, 0, 1, 1, 2], [0], [0]>} : vector<4x16x16xbf16>, vector<4x16x16xbf16>, vector<4x16x16xf32> -> vector<4x16x16xf32>
    "tpu.trace_stop"() : () -> ()
    %216 = vector.extract_strided_slice %215 {offsets = [0, 0, 0], sizes = [1, 16, 16], strides = [1, 1, 1]} : vector<4x16x16xf32> to vector<1x16x16xf32>
    %217 = vector.shape_cast %216 : vector<1x16x16xf32> to vector<16x16xf32>
    %218 = vector.extract_strided_slice %215 {offsets = [1, 0, 0], sizes = [1, 16, 16], strides = [1, 1, 1]} : vector<4x16x16xf32> to vector<1x16x16xf32>
    %219 = vector.shape_cast %218 : vector<1x16x16xf32> to vector<16x16xf32>
    %220 = vector.extract_strided_slice %215 {offsets = [2, 0, 0], sizes = [1, 16, 16], strides = [1, 1, 1]} : vector<4x16x16xf32> to vector<1x16x16xf32>
    %221 = vector.shape_cast %220 : vector<1x16x16xf32> to vector<16x16xf32>
    %222 = vector.extract_strided_slice %215 {offsets = [3, 0, 0], sizes = [1, 16, 16], strides = [1, 1, 1]} : vector<4x16x16xf32> to vector<1x16x16xf32>
    %223 = vector.shape_cast %222 : vector<1x16x16xf32> to vector<16x16xf32>
    %224 = tpu.concatenate %217, %219, %221, %223 in 1 : vector<16x16xf32>, vector<16x16xf32>, vector<16x16xf32>, vector<16x16xf32> -> vector<16x64xf32>
    %225 = arith.truncf %224 : vector<16x64xf32> to vector<16x64xbf16>
    %c1_56 = arith.constant 1 : index
    %c0_57 = arith.constant 0 : index
    %c0_58 = arith.constant 0 : index
    %226 = vector.load %arg8[%c1_56, %c0_57, %c0_58] : memref<2x64x64xbf16, #tpu.memory_space<vmem>>, vector<1x64x64xbf16>
    %227 = vector.shape_cast %226 : vector<1x64x64xbf16> to vector<64x64xbf16>
    %cst_59 = arith.constant dense<0.000000e+00> : vector<16x64xf32>
    %228 = tpu.matmul %225, %227, %cst_59 {dimension_numbers = #tpu.dot_dimension_numbers<[1], [0], [0], [1], [0, 0, 1, 1], [], []>} : vector<16x64xbf16>, vector<64x64xbf16>, vector<16x64xf32> -> vector<16x64xf32>
    %229 = arith.addf %137, %228 : vector<16x64xf32>
    %c1_60 = arith.constant 1 : index
    %c0_61 = arith.constant 0 : index
    %c0_62 = arith.constant 0 : index
    %230 = vector.load %arg6[%c1_60, %c0_61, %c0_62] : memref<2x1x64xf32, #tpu.memory_space<vmem>>, vector<1x1x64xf32>
    %231 = vector.shape_cast %230 : vector<1x1x64xf32> to vector<1x64xf32>
    %232 = arith.mulf %229, %229 : vector<16x64xf32>
    %cst_63 = arith.constant dense<0.000000e+00> : vector<16xf32>
    %233 = vector.multi_reduction <add>, %232, %cst_63 [1] : vector<16x64xf32> to vector<16xf32>
    %234 = vector.shape_cast %233 : vector<16xf32> to vector<16x1xf32>
    %cst_64 = arith.constant 6.400000e+01 : f32
    %235 = vector.broadcast %cst_64 : f32 to vector<16x1xf32>
    %236 = arith.divf %234, %235 : vector<16x1xf32>
    %cst_65 = arith.constant 9.99999974E-6 : f32
    %237 = vector.broadcast %cst_65 : f32 to vector<16x1xf32>
    %238 = arith.addf %236, %237 : vector<16x1xf32>
    %239 = math.rsqrt %238 : vector<16x1xf32>
    %240 = vector.broadcast %239 : vector<16x1xf32> to vector<16x64xf32>
    %241 = arith.mulf %229, %240 : vector<16x64xf32>
    %242 = vector.broadcast %231 : vector<1x64xf32> to vector<16x64xf32>
    %243 = arith.mulf %241, %242 : vector<16x64xf32>
    %244 = arith.truncf %243 : vector<16x64xf32> to vector<16x64xbf16>
    %c1_66 = arith.constant 1 : index
    %c0_67 = arith.constant 0 : index
    %c0_68 = arith.constant 0 : index
    %245 = vector.load %arg9[%c1_66, %c0_67, %c0_68] : memref<2x64x512xbf16, #tpu.memory_space<vmem>>, vector<1x64x512xbf16>
    %246 = vector.shape_cast %245 : vector<1x64x512xbf16> to vector<64x512xbf16>
    %cst_69 = arith.constant dense<0.000000e+00> : vector<16x512xf32>
    %247 = tpu.matmul %244, %246, %cst_69 {dimension_numbers = #tpu.dot_dimension_numbers<[1], [0], [0], [1], [0, 0, 1, 1], [], []>} : vector<16x64xbf16>, vector<64x512xbf16>, vector<16x512xf32> -> vector<16x512xf32>
    %248 = vector.extract_strided_slice %247 {offsets = [0, 0], sizes = [16, 256], strides = [1, 1]} : vector<16x512xf32> to vector<16x256xf32>
    %249 = vector.extract_strided_slice %247 {offsets = [0, 256], sizes = [16, 256], strides = [1, 1]} : vector<16x512xf32> to vector<16x256xf32>
    %250 = arith.negf %248 : vector<16x256xf32>
    %251 = math.exp %250 : vector<16x256xf32>
    %cst_70 = arith.constant 1.000000e+00 : f32
    %252 = vector.broadcast %cst_70 : f32 to vector<16x256xf32>
    %253 = arith.addf %252, %251 : vector<16x256xf32>
    %254 = arith.divf %252, %253 : vector<16x256xf32>
    %255 = arith.mulf %248, %254 : vector<16x256xf32>
    %256 = arith.mulf %255, %249 : vector<16x256xf32>
    %257 = arith.truncf %256 : vector<16x256xf32> to vector<16x256xbf16>
    %c1_71 = arith.constant 1 : index
    %c0_72 = arith.constant 0 : index
    %c0_73 = arith.constant 0 : index
    %258 = vector.load %arg10[%c1_71, %c0_72, %c0_73] : memref<2x256x64xbf16, #tpu.memory_space<vmem>>, vector<1x256x64xbf16>
    %259 = vector.shape_cast %258 : vector<1x256x64xbf16> to vector<256x64xbf16>
    %cst_74 = arith.constant dense<0.000000e+00> : vector<16x64xf32>
    %260 = tpu.matmul %257, %259, %cst_74 {dimension_numbers = #tpu.dot_dimension_numbers<[1], [0], [0], [1], [0, 0, 1, 1], [], []>} : vector<16x256xbf16>, vector<256x64xbf16>, vector<16x64xf32> -> vector<16x64xf32>
    %261 = arith.addf %229, %260 : vector<16x64xf32>
    %c0_75 = arith.constant 0 : index
    %c0_76 = arith.constant 0 : index
    %262 = vector.load %arg11[%c0_75, %c0_76] : memref<1x64xf32, #tpu.memory_space<vmem>>, vector<1x64xf32>
    %263 = arith.mulf %261, %261 : vector<16x64xf32>
    %cst_77 = arith.constant dense<0.000000e+00> : vector<16xf32>
    %264 = vector.multi_reduction <add>, %263, %cst_77 [1] : vector<16x64xf32> to vector<16xf32>
    %265 = vector.shape_cast %264 : vector<16xf32> to vector<16x1xf32>
    %cst_78 = arith.constant 6.400000e+01 : f32
    %266 = vector.broadcast %cst_78 : f32 to vector<16x1xf32>
    %267 = arith.divf %265, %266 : vector<16x1xf32>
    %cst_79 = arith.constant 9.99999974E-6 : f32
    %268 = vector.broadcast %cst_79 : f32 to vector<16x1xf32>
    %269 = arith.addf %267, %268 : vector<16x1xf32>
    %270 = math.rsqrt %269 : vector<16x1xf32>
    %271 = vector.broadcast %270 : vector<16x1xf32> to vector<16x64xf32>
    %272 = arith.mulf %261, %271 : vector<16x64xf32>
    %273 = vector.broadcast %262 : vector<1x64xf32> to vector<16x64xf32>
    %274 = arith.mulf %272, %273 : vector<16x64xf32>
    %275 = arith.truncf %274 : vector<16x64xf32> to vector<16x64xbf16>
    %c0_80 = arith.constant 0 : index
    %c0_81 = arith.constant 0 : index
    %276 = vector.load %arg12[%c0_80, %c0_81] : memref<64x256xbf16, #tpu.memory_space<vmem>>, vector<64x256xbf16>
    %cst_82 = arith.constant dense<0.000000e+00> : vector<16x256xf32>
    %277 = tpu.matmul %275, %276, %cst_82 {dimension_numbers = #tpu.dot_dimension_numbers<[1], [0], [0], [1], [0, 0, 1, 1], [], []>} : vector<16x64xbf16>, vector<64x256xbf16>, vector<16x256xf32> -> vector<16x256xf32>
    %c0_83 = arith.constant 0 : index
    %c0_84 = arith.constant 0 : index
    %278 = vector.load %arg13[%c0_83, %c0_84] : memref<16x256xf32, #tpu.memory_space<vmem>>, vector<16x256xf32>
    tpu.vector_store %arg13[%c0_83, %c0_84], %277 {strides = array<i32>} : memref<16x256xf32, #tpu.memory_space<vmem>>, vector<16x256xf32>,
    return
  }
  func.func @transform_0(%arg0: i32) -> (i32, i32) {
    %c0_i32 = arith.constant 0 : i32
    %c0_i32_0 = arith.constant 0 : i32
    %c0_i32_1 = arith.constant 0 : i32
    return %c0_i32, %c0_i32_0 : i32, i32
  }
  func.func @transform_1(%arg0: i32) -> (i32, i32) {
    %c0_i32 = arith.constant 0 : i32
    %c0_i32_0 = arith.constant 0 : i32
    %c0_i32_1 = arith.constant 0 : i32
    return %c0_i32, %c0_i32_0 : i32, i32
  }
  func.func @transform_2(%arg0: i32) -> (i32, i32) {
    %c0_i32 = arith.constant 0 : i32
    %c0_i32_0 = arith.constant 0 : i32
    %c0_i32_1 = arith.constant 0 : i32
    return %c0_i32, %c0_i32_0 : i32, i32
  }
  func.func @transform_3(%arg0: i32) -> (i32, i32) {
    %c0_i32 = arith.constant 0 : i32
    %c0_i32_0 = arith.constant 0 : i32
    %c0_i32_1 = arith.constant 0 : i32
    return %c0_i32, %c0_i32_0 : i32, i32
  }
  func.func @transform_4(%arg0: i32) -> (i32, i32, i32) {
    %c0_i32 = arith.constant 0 : i32
    %c0_i32_0 = arith.constant 0 : i32
    %c0_i32_1 = arith.constant 0 : i32
    %c0_i32_2 = arith.constant 0 : i32
    return %c0_i32, %c0_i32_0, %c0_i32_1 : i32, i32, i32
  }
  func.func @transform_5(%arg0: i32) -> (i32, i32, i32) {
    %c0_i32 = arith.constant 0 : i32
    %c0_i32_0 = arith.constant 0 : i32
    %c0_i32_1 = arith.constant 0 : i32
    %c0_i32_2 = arith.constant 0 : i32
    return %c0_i32, %c0_i32_0, %c0_i32_1 : i32, i32, i32
  }
  func.func @transform_6(%arg0: i32) -> (i32, i32, i32) {
    %c0_i32 = arith.constant 0 : i32
    %c0_i32_0 = arith.constant 0 : i32
    %c0_i32_1 = arith.constant 0 : i32
    %c0_i32_2 = arith.constant 0 : i32
    return %c0_i32, %c0_i32_0, %c0_i32_1 : i32, i32, i32
  }
  func.func @transform_7(%arg0: i32) -> (i32, i32, i32) {
    %c0_i32 = arith.constant 0 : i32
    %c0_i32_0 = arith.constant 0 : i32
    %c0_i32_1 = arith.constant 0 : i32
    %c0_i32_2 = arith.constant 0 : i32
    return %c0_i32, %c0_i32_0, %c0_i32_1 : i32, i32, i32
  }
  func.func @transform_8(%arg0: i32) -> (i32, i32, i32) {
    %c0_i32 = arith.constant 0 : i32
    %c0_i32_0 = arith.constant 0 : i32
    %c0_i32_1 = arith.constant 0 : i32
    %c0_i32_2 = arith.constant 0 : i32
    return %c0_i32, %c0_i32_0, %c0_i32_1 : i32, i32, i32
  }
  func.func @transform_9(%arg0: i32) -> (i32, i32, i32) {
    %c0_i32 = arith.constant 0 : i32
    %c0_i32_0 = arith.constant 0 : i32
    %c0_i32_1 = arith.constant 0 : i32
    %c0_i32_2 = arith.constant 0 : i32
    return %c0_i32, %c0_i32_0, %c0_i32_1 : i32, i32, i32
  }
  func.func @transform_10(%arg0: i32) -> (i32, i32) {
    %c0_i32 = arith.constant 0 : i32
    %c0_i32_0 = arith.constant 0 : i32
    %c0_i32_1 = arith.constant 0 : i32
    return %c0_i32, %c0_i32_0 : i32, i32
  }
  func.func @transform_11(%arg0: i32) -> (i32, i32) {
    %c0_i32 = arith.constant 0 : i32
    %c0_i32_0 = arith.constant 0 : i32
    %c0_i32_1 = arith.constant 0 : i32
    return %c0_i32, %c0_i32_0 : i32, i32
  }
  func.func @transform_12(%arg0: i32) -> (i32, i32) {
    %c0_i32 = arith.constant 0 : i32
    %c0_i32_0 = arith.constant 0 : i32
    %c0_i32_1 = arith.constant 0 : i32
    return %c0_i32, %c0_i32_0 : i32, i32
  }
}

</mosaic_0001>

<bundles_post_ra>
// kernel: tpu_custom_call.1
= control target key start
LH: loop header
LB: loop body
LE: loop exit
PB: predicated region body
PF: predicated region fallthrough
CT: control target
= control target key end

     0   :  { %17 = vsyncpa [#allocation3], 0  ;;  %s4971_s0 = inlined_call_operand.vmem [shape: bf16[16,64], index: 0, kind: input, shape index: {}]   ;;  %s4972_s1 = inlined_call_operand.vmem [shape: f32[16,16], index: 1, kind: input, shape index: {}]   ;;  %s4973_s2 = inlined_call_operand.hbm [shape: f32[16,16], index: 2, kind: input, shape index: {}]   ;;  %s4974_s3 = inlined_call_operand.hbm [shape: f32[16,16], index: 3, kind: input, shape index: {}]   ;;  %s4975_s4 = inlined_call_operand.vmem [shape: f32[2,1,64], index: 4, kind: input, shape index: {}]   ;;  %s4976_s5 = inlined_call_operand.vmem [shape: f32[2,1,64], index: 5, kind: input, shape index: {}]   ;;  %s4977_s6 = inlined_call_operand.vmem [shape: bf16[2,64,192], index: 6, kind: input, shape index: {}]   ;;  %s4978_s7 = inlined_call_operand.hbm [shape: bf16[2,64,64], index: 7, kind: input, shape index: {}]   ;;  %s4979_s8 = inlined_call_operand.vmem [shape: bf16[2,64,512], index: 8, kind: input, shape index: {}]   ;;  %s4980_s9 = inlined_call_operand.vmem [shape: bf16[2,256,64], index: 9, kind: input, shape index: {}]   ;;  %s4981_s10 = inlined_call_operand.vmem [shape: f32[1,64], index: 10, kind: input, shape index: {}]   ;;  %s4982_s11 = inlined_call_operand.hbm [shape: bf16[64,256], index: 11, kind: input, shape index: {}]   ;;  %s4983_s12 = inlined_call_operand.hbm [shape: f32[16,256], index: 12, kind: output, shape index: {}]  }
   0x1   :  { %18 = vsyncpa [#allocation6], 0 }
   0x2   :  { %19 = vsyncpa [#allocation9], 0 }
   0x3   :  { %20 = vsyncpa [#allocation4], 0  ;;  %s3865_s21 = smov [#allocation5]   ;;  %s3866_s23 = smov [#allocation2]  }
   0x4   :  { %s42_s22 = sshll.u32 %s3865_s21, 4  ;;  %s30_s24 = sshll.u32 %s3866_s23, 4  ;;  %s43_s22 = int_to_ptr.vmem [resolvable:$true] %s42_s22  ;;  %s3952_s24 = int_to_ptr.vmem [resolvable:$true] %s30_s24 }
   0x5   :  { %s3747_s27 = scalar_lea.hbm %s4974_s3, 256 }
   0x6   :  { %p3748_p0 = scmp.ne.s32.totalorder %s4974_s3, %s3747_s27  ;;  %p3751_p1 = scmp.lt.u32.totalorder %s3747_s27, %s4974_s3 }
   0x8   :  { %p3753_p2 = pnand %p3751_p1, %p3748_p0 }
   0xa   :  { %3756 = shalt.err (!%p3753_p2)
}
   0xb   :  { %s3757_s14 = scalar_lea.vmem %s43_s22, 256  ;;  %p3762_p4 = scmp.lt.s32.totalorder %s43_s22, %s43_s22 }
   0xc   :  { %p3758_p3 = scmp.ne.s32.totalorder %s43_s22, %s3757_s14  ;;  %p3763_p5 = scmp.lt.s32.totalorder %s3757_s14, %s3757_s14 }
   0xe   :  { %p3764_p6 = por %p3763_p5, %p3762_p4 }
  0x10   :  { %p3765_p7 = pnand %p3764_p6, %p3758_p3 }
  0x12   :  { %3768 = shalt.err (!%p3765_p7)
}
  0x13   :  { %s3867_s15 = smov 128   ;;  %s3868_s16 = smov 8  }
  0x14   :  { %48 = dma.hbm_to_vmem [thread:$0]  %s4974_s3, 256, %s43_s22, [#allocation6], %s3867_s15, %s3867_s15, %s3868_s16  }
  0x15   :  { %s3769_s21 = scalar_lea.hbm %s4973_s2, 256 }
  0x16   :  { %p3770_p8 = scmp.ne.s32.totalorder %s4973_s2, %s3769_s21  ;;  %p3773_p9 = scmp.lt.u32.totalorder %s3769_s21, %s4973_s2 }
  0x18   :  { %p3775_p10 = pnand %p3773_p9, %p3770_p8 }
  0x1a   :  { %3778 = shalt.err (!%p3775_p10)
}
  0x1b   :  { %s3779_s28 = scalar_lea.vmem %s3952_s24, 256  ;;  %p3784_p12 = scmp.lt.s32.totalorder %s3952_s24, %s3952_s24 }
  0x1c   :  { %p3780_p11 = scmp.ne.s32.totalorder %s3952_s24, %s3779_s28  ;;  %p3785_p13 = scmp.lt.s32.totalorder %s3779_s28, %s3779_s28 }
  0x1e   :  { %p3786_p0 = por %p3785_p13, %p3784_p12 }
  0x20   :  { %p3787_p1 = pnand %p3786_p0, %p3780_p11 }
  0x22   :  { %3790 = shalt.err (!%p3787_p1)
}
  0x23   :  { %36 = dma.hbm_to_vmem [thread:$0]  %s4973_s2, 256, %s3952_s24, [#allocation3], %s3867_s15, %s3867_s15, %s3868_s16  }
  0x24   :  { %s3869_s29 = smov [#allocation7]   ;;  %s3791_s17 = scalar_lea.hbm %s4978_s7, 1024 }
  0x25   :  { %s60_s30 = sshll.u32 %s3869_s29, 4  ;;  %p3792_p2 = scmp.ne.s32.totalorder %s4978_s7, %s3791_s17  ;;  %s61_s30 = int_to_ptr.vmem [resolvable:$true] %s60_s30 }
  0x26   :  { %p3795_p3 = scmp.lt.u32.totalorder %s3791_s17, %s4978_s7 }
  0x28   :  { %p3797_p4 = pnand %p3795_p3, %p3792_p2 }
  0x2a   :  { %3800 = shalt.err (!%p3797_p4)
}
  0x2b   :  { %s3801_s23 = scalar_lea.vmem %s61_s30, 1024  ;;  %p3806_p6 = scmp.lt.s32.totalorder %s61_s30, %s61_s30 }
  0x2c   :  { %p3802_p5 = scmp.ne.s32.totalorder %s61_s30, %s3801_s23  ;;  %p3807_p7 = scmp.lt.s32.totalorder %s3801_s23, %s3801_s23 }
  0x2e   :  { %p3808_p8 = por %p3807_p7, %p3806_p6 }
  0x30   :  { %p3809_p9 = pnand %p3808_p8, %p3802_p5 }
  0x32   :  { %3812 = shalt.err (!%p3809_p9)
}
  0x33   :  { %s3870_s2 = smov 64   ;;  %s3871_s24 = smov 4  }
  0x34   :  { %66 = dma.hbm_to_vmem [thread:$0]  %s4978_s7, 1024, %s61_s30, [#allocation6], %s3870_s2, %s3870_s2, %s3871_s24  }
  0x35   :  { %s3872_s27 = smov [#allocation8]   ;;  %s3813_s29 = scalar_lea.hbm %s4982_s11, 1024 }
  0x36   :  { %s78_s28 = sshll.u32 %s3872_s27, 4  ;;  %p3814_p10 = scmp.ne.s32.totalorder %s4982_s11, %s3813_s29  ;;  %s79_s28 = int_to_ptr.vmem [resolvable:$true] %s78_s28 }
  0x37   :  { %p3817_p11 = scmp.lt.u32.totalorder %s3813_s29, %s4982_s11 }
  0x39   :  { %p3819_p12 = pnand %p3817_p11, %p3814_p10 }
  0x3b   :  { %3822 = shalt.err (!%p3819_p12)
}
  0x3c   :  { %s3823_s19 = scalar_lea.vmem %s79_s28, 1024  ;;  %p3828_p0 = scmp.lt.s32.totalorder %s79_s28, %s79_s28 }
  0x3d   :  { %p3824_p13 = scmp.ne.s32.totalorder %s79_s28, %s3823_s19  ;;  %p3829_p1 = scmp.lt.s32.totalorder %s3823_s19, %s3823_s19 }
  0x3f   :  { %p3830_p2 = por %p3829_p1, %p3828_p0 }
  0x41   :  { %p3831_p3 = pnand %p3830_p2, %p3824_p13 }
  0x43   :  { %3834 = shalt.err (!%p3831_p3)
}
  0x44   :  { %84 = dma.hbm_to_vmem [thread:$0]  %s4982_s11, 1024, %s79_s28, [#allocation9], %s3867_s15, %s3867_s15, %s3868_s16  }
  0x45   :  { %3857 = dma.done.wait [#allocation3], 256  }
  0x46   :  { %3858 = vsyncadd [#allocation3], 4294967040 }
  0x47   :  { %3859 = dma.done.wait [#allocation6], 1280  }
  0x48   :  { %3860 = vsyncadd [#allocation6], 4294966016 }
  0x49   :  { %3861 = dma.done.wait [#allocation9], 1024  }
  0x4a   :  { %3862 = vsyncadd [#allocation9], 4294966272  ;;  %v3210_v0 = vld [vmem:[%s4971_s0] sm:$0xff]   ;;  %vm111_vm0 = vcmask 523264   ;;  %v3504_v9 = vld [vmem:[%s4977_s6 + $0x14] ss:$8 sps:$4 sm:$0xff]  }
  0x4b   :  { %v4021_v1 = vunpack.c.l.bf16 %v3210_v0  ;;  %v4023_v2 = vunpack.c.h.bf16 %v3210_v0  ;;  %v3501_v7 = vld [vmem:[%s4977_s6 + $0x4] ss:$8 sps:$4 sm:$0xff]   ;;  %v3503_v8 = vld [vmem:[%s4977_s6] ss:$8 sps:$4 sm:$0xff]   ;;  %v3506_v10 = vld [vmem:[%s4977_s6 + $0x10] ss:$8 sps:$4 sm:$0xff]  }
  0x4c   :  { %187 = vmatprep.subr.bf16.mxu0 %v3501_v7  ;;  %v3507_v11 = vld [vmem:[%s4977_s6 + $0x24] ss:$8 sps:$4 sm:$0xff]   ;;  %v3873_v12 = vmov 0   ;;  %v3509_v13 = vld [vmem:[%s4977_s6 + $0x20] ss:$8 sps:$4 sm:$0xff]   ;;  %s3874_s30 = smov 96  }
  0x4d   :  { %v109_v3 = vmul.f32 %v4021_v1, %v4021_v1  ;;  %v110_v4 = vmul.f32 %v4023_v2, %v4023_v2  ;;  %188 = vmatpush1.bf16.msra.mxu0 %v3503_v8  ;;  %219 = vmatprep.mubr.bf16.mxu0 %v3873_v12  ;;  %v3510_v14 = vld [vmem:[%s4977_s6 + $0x34] ss:$8 sps:$4 sm:$0xff]   ;;  %v3512_v15 = vld [vmem:[%s4977_s6 + $0x30] ss:$8 sps:$4 sm:$0xff]   ;;  %v3017_v25 = vld [vmem:[%s4975_s4] ss:$0 sm:$0xff] }
  0x4e   :  { %189 = vmatprep.subr.bf16.mxu0 %v3504_v9  ;;  %s3875_s20 = smov 112   ;;  %s3876_s21 = smov 80   ;;  %vm342_vm1 = vcmask 64512   ;;  %v4143_v51 = vld [vmem:[#allocation2] sm:$0xff]  ;;  %v4164_v59 = vld [vmem:[%s4972_s1 + $0x8] sm:$0xff]  ;;  %vm3881_vm2 = vmmov 0  }
  0x4f   :  { %v112_v5 = vsel %vm111_vm0, %v109_v3, 0.0  ;;  %v115_v6 = vsel %vm111_vm0, %v110_v4, 0.0  ;;  %s3877_s11 = smov 72   ;;  %s3878_s15 = smov 56   ;;  %v4148_v53 = vld [vmem:[%s4972_s1] sm:$0xff]  ;;  %v4166_v60 = vld [vmem:[#allocation2 + $0x8] sm:$0xff] }
  0x50   :  { %113 = vadd.xlane.f32.xlu0 %v112_v5  ;;  %s3879_s26 = smov 120   ;;  %vm498_vm3 = vcmask 130048   ;;  %s3882_s27 = smov 32   ;;  %vm994_vm4 = vcmask 261120   ;;  %vm997_vm5 = vcmask 392192  }
  0x51   :  { %190 = vmatpush1.bf16.msra.mxu0 %v3506_v10  ;;  %s3883_s28 = smov 16   ;;  %s3884_s3 = smov 48  }
  0x52   :  { %191 = vmatprep.subr.bf16.mxu0 %v3507_v11  ;;  %s3885_s17 = smov [#allocation10]  }
  0x53   :  { %s3003_s18 = sshll.u32 %s3885_s17, 4  ;;  %s3004_s18 = int_to_ptr.vmem [resolvable:$true] %s3003_s18 }
  0x54   :  { %116 = vadd.xlane.f32.xlu0 %v115_v6  ;;  %s3835_s19 = scalar_lea.vmem %s3004_s18, 512  ;;  %p3840_p5 = scmp.lt.s32.totalorder %s3004_s18, %s3004_s18 }
  0x55   :  { %192 = vmatpush1.bf16.msra.mxu0 %v3509_v13  ;;  %p3836_p4 = scmp.ne.s32.totalorder %s3004_s18, %s3835_s19  ;;  %p3841_p6 = scmp.lt.s32.totalorder %s3835_s19, %s3835_s19 }
  0x56   :  { %193 = vmatprep.subr.bf16.mxu0 %v3510_v14 }
  0x57   :  { %p3842_p7 = por %p3841_p6, %p3840_p5 }
  0x59   :  { %194 = vmatpush1.bf16.msra.mxu0 %v3512_v15  ;;  %p3843_p8 = pnand %p3842_p7, %p3836_p4 }
  0xdd   :  { %v114_v16 = vpop.xlane.xlu0 %113 }
  0xde   :  { %v119_v17 = vmul.f32 0.015625, %v114_v16 }
  0xe0   :  { %v121_v18 = vadd.f32 1e-05, %v119_v17 }
  0xe1   :  { %v117_v19 = vpop.xlane.xlu0 %116 }
  0xe2   :  { %3625 = vrsqrt.f32 %v121_v18  ;;  %v120_v20 = vmul.f32 0.015625, %v117_v19 }
  0xe4   :  { %v122_v21 = vadd.f32 1e-05, %v120_v20 }
  0xe6   :  { %3627 = vrsqrt.f32 %v122_v21 }
  0xec   :  { %v3626_v22 = vpop.eup %3625 }
  0xed   :  { %v125_v23 = vmul.f32 %v3626_v22, %v4021_v1 }
  0xef   :  { %v133_v27 = vmul.f32 %v3017_v25, %v125_v23 }
  0xf0   :  { %v3628_v24 = vpop.eup %3627 }
  0xf1   :  { %v126_v26 = vmul.f32 %v3628_v24, %v4023_v2 }
  0xf3   :  { %v134_v28 = vmul.f32 %v3017_v25, %v126_v26  ;;  %v3880_v26 = vmov 0.0  }
  0xf4   :  { %3299 = vmatprep.subr.bf16.mxu1 %v3880_v26  ;;  %3311 = vmatprep.subr.bf16.mxu0 %v3880_v26 }
  0xf5   :  { %v135_v29 = vpack.c.bf16 %v134_v28, %v133_v27  ;;  %3301 = vmatprep.mubr.msk.bf16.mxu1 %vm3881_vm2, %v3880_v26 }
  0xf7   :  { %3026 = vmatmul.mubr.msk.bf16.vlgmr.msra.gmra.mrb[0].mxu0 %vm111_vm0, %v135_v29 }
  0xf8   :  { %3313 = vmatprep.mubr.msk.bf16.mxu0 %vm3881_vm2, %v3880_v26 }
 0x1ca   :  { %v4062_v30 = vpop.f32.mrb[0].mxu0 }
 0x1cb   :  { %238 = vrot.lane.b32.xlu0 %v4062_v30, %s3874_s30  ;;  %232 = vrot.lane.b32.xlu1 %v4062_v30, %s3875_s20  ;;  %v4068_v31 = vpop.f32.mrb[1].mxu0  ;;  %v278_v36 = vsub.f32 0.0, %v4062_v30 }
 0x1cc   :  { %v4070_v32 = vpop.f32.mrb[2].mxu0 }
 0x1cd   :  { %v4072_v33 = vpop.f32.mrb[3].mxu0  ;;  %v279_v37 = vsub.f32 0.0, %v4070_v32 }
 0x1ce   :  { %v788_v34 = vpack.c.bf16 %v4072_v33, %v4068_v31  ;;  %v4078_v35 = vpack.i.bf16 %v4072_v33, %v4068_v31 }
 0x1cf   :  { %244 = vrot.lane.b32.xlu1 %v4062_v30, %s3876_s21  ;;  %413 = vrot.lane.b32.xlu0 %v4070_v32, %s3877_s11 }
 0x1d3   :  { %234 = vrot.lane.b32.xlu1 %v4070_v32, %s3875_s20 }
 0x1d7   :  { %240 = vrot.lane.b32.xlu1 %v4070_v32, %s3874_s30 }
 0x1db   :  { %246 = vrot.lane.b32.xlu1 %v4070_v32, %s3876_s21 }
 0x1df   :  { %411 = vrot.lane.b32.xlu1 %v4062_v30, %s3877_s11 }
 0x1e3   :  { %387 = vrot.lane.b32.xlu1 %v278_v36, %s3878_s15 }
 0x1e7   :  { %389 = vrot.lane.b32.xlu1 %v279_v37, %s3878_s15 }
 0x23d   :  { %v4100_v38 = vpop.permute.xlu1 %232  ;;  %v4104_v39 = vpop.permute.xlu0 %238 }
 0x23e   :  { %415 = vrot.lane.b32.xlu1 %v4100_v38, %s3877_s11  ;;  %v280_v41 = vsub.f32 0.0, %v4100_v38  ;;  %v282_v43 = vsub.f32 0.0, %v4104_v39 }
 0x241   :  { %v4106_v40 = vpop.permute.xlu1 %244  ;;  %v414_v57 = vpop.permute.xlu0 %413 }
 0x242   :  { %419 = vrot.lane.b32.xlu1 %v4104_v39, %s3877_s11  ;;  %v284_v46 = vsub.f32 0.0, %v4106_v40 }
 0x245   :  { %v4111_v42 = vpop.permute.xlu1 %234 }
 0x246   :  { %417 = vrot.lane.b32.xlu0 %v4111_v42, %s3877_s11  ;;  %391 = vrot.lane.b32.xlu1 %v280_v41, %s3878_s15  ;;  %v281_v45 = vsub.f32 0.0, %v4111_v42 }
 0x249   :  { %v4119_v44 = vpop.permute.xlu1 %240 }
 0x24a   :  { %421 = vrot.lane.b32.xlu0 %v4119_v44, %s3877_s11  ;;  %395 = vrot.lane.b32.xlu1 %v282_v43, %s3878_s15  ;;  %v283_v48 = vsub.f32 0.0, %v4119_v44 }
 0x24d   :  { %v4128_v47 = vpop.permute.xlu1 %246 }
 0x24e   :  { %393 = vrot.lane.b32.xlu0 %v281_v45, %s3878_s15  ;;  %399 = vrot.lane.b32.xlu1 %v284_v46, %s3878_s15  ;;  %v285_v50 = vsub.f32 0.0, %v4128_v47 }
 0x251   :  { %v412_v49 = vpop.permute.xlu1 %411 }
 0x252   :  { %397 = vrot.lane.b32.xlu0 %v283_v48, %s3878_s15  ;;  %423 = vrot.lane.b32.xlu1 %v4106_v40, %s3877_s11 }
 0x255   :  { %v388_v52 = vpop.permute.xlu1 %387 }
 0x256   :  { %v435_v54 = vsel %vm342_vm1, %v388_v52, %v412_v49  ;;  %401 = vrot.lane.b32.xlu0 %v285_v50, %s3878_s15  ;;  %373 = vrot.lane.b32.xlu1 %v4148_v53, %s3870_s2 }
 0x257   :  { %v443_v55 = vmul.f32 %v435_v54, %v4143_v51 }
 0x259   :  { %v390_v56 = vpop.permute.xlu1 %389 }
 0x25a   :  { %425 = vrot.lane.b32.xlu0 %v4128_v47, %s3877_s11  ;;  %459 = vrot.lane.b32.xlu1 %v443_v55, %s3870_s2  ;;  %v436_v58 = vsel %vm342_vm1, %v390_v56, %v414_v57 }
 0x25b   :  { %v444_v61 = vmul.f32 %v436_v58, %v4166_v60 }
 0x25e   :  { %375 = vrot.lane.b32.xlu0 %v4164_v59, %s3870_s2 }
 0x262   :  { %461 = vrot.lane.b32.xlu0 %v444_v61, %s3870_s2 }
 0x2b0   :  { %v416_v62 = vpop.permute.xlu1 %415 }
 0x2b4   :  { %v420_v63 = vpop.permute.xlu1 %419 }
 0x2b8   :  { %v418_v0 = vpop.permute.xlu0 %417  ;;  %v392_v3 = vpop.permute.xlu1 %391 }
 0x2b9   :  { %v437_v4 = vsel %vm342_vm1, %v392_v3, %v416_v62 }
 0x2ba   :  { %v445_v5 = vmul.f32 %v437_v4, %v4143_v51 }
 0x2bc   :  { %v422_v6 = vpop.permute.xlu0 %421  ;;  %463 = vrot.lane.b32.xlu1 %v445_v5, %s3870_s2  ;;  %v396_v7 = vpop.permute.xlu1 %395 }
 0x2bd   :  { %v439_v8 = vsel %vm342_vm1, %v396_v7, %v420_v63 }
 0x2be   :  { %v447_v9 = vmul.f32 %v439_v8, %v4143_v51 }
 0x2c0   :  { %v394_v10 = vpop.permute.xlu0 %393  ;;  %467 = vrot.lane.b32.xlu1 %v447_v9, %s3870_s2  ;;  %v400_v11 = vpop.permute.xlu1 %399 }
 0x2c1   :  { %v438_v13 = vsel %vm342_vm1, %v394_v10, %v418_v0 }
 0x2c2   :  { %v446_v14 = vmul.f32 %v438_v13, %v4166_v60 }
 0x2c4   :  { %v398_v15 = vpop.permute.xlu0 %397  ;;  %465 = vrot.lane.b32.xlu0 %v446_v14, %s3870_s2  ;;  %v424_v16 = vpop.permute.xlu1 %423 }
 0x2c5   :  { %v440_v17 = vsel %vm342_vm1, %v398_v15, %v422_v6  ;;  %v441_v18 = vsel %vm342_vm1, %v400_v11, %v424_v16 }
 0x2c6   :  { %v448_v19 = vmul.f32 %v440_v17, %v4166_v60  ;;  %v449_v20 = vmul.f32 %v441_v18, %v4143_v51 }
 0x2c8   :  { %v402_v21 = vpop.permute.xlu0 %401  ;;  %469 = vrot.lane.b32.xlu0 %v448_v19, %s3870_s2  ;;  %471 = vrot.lane.b32.xlu1 %v449_v20, %s3870_s2  ;;  %v4187_v22 = vpop.permute.xlu1 %373  ;;  %v271_v20 = vmul.f32 %v4070_v32, %v4164_v59 }
 0x2c9   :  { %v379_v29 = vmul.f32 %v4187_v22, %v4062_v30  ;;  %v383_v58 = vmul.f32 %v4187_v22, %v4104_v39  ;;  %v385_v6 = vmul.f32 %v4187_v22, %v4106_v40 }
 0x2cc   :  { %v426_v23 = vpop.permute.xlu0 %425  ;;  %296 = vrot.lane.b32.xlu1 %v279_v37, %s3879_s26  ;;  %v460_v28 = vpop.permute.xlu1 %459 }
 0x2cd   :  { %v442_v24 = vsel %vm342_vm1, %v402_v21, %v426_v23  ;;  %v483_v52 = vadd.f32 %v460_v28, %v379_v29  ;;  %v270_v21 = vmul.f32 %v4062_v30, %v4148_v53 }
 0x2ce   :  { %v450_v25 = vmul.f32 %v442_v24, %v4166_v60 }
 0x2d0   :  { %v4196_v27 = vpop.permute.xlu0 %375  ;;  %473 = vrot.lane.b32.xlu0 %v450_v25, %s3870_s2  ;;  %320 = vrot.lane.b32.xlu1 %v4070_v32, %s3868_s16 }
 0x2d1   :  { %v380_v37 = vmul.f32 %v4196_v27, %v4070_v32  ;;  %v384_v61 = vmul.f32 %v4196_v27, %v4119_v44  ;;  %v386_v7 = vmul.f32 %v4196_v27, %v4128_v47 }
 0x2d4   :  { %294 = vrot.lane.b32.xlu0 %v278_v36, %s3879_s26  ;;  %v462_v49 = vpop.permute.xlu0 %461  ;;  %298 = vrot.lane.b32.xlu1 %v280_v41, %s3879_s26  ;;  %v381_v41 = vmul.f32 %v4187_v22, %v4100_v38 }
 0x2d5   :  { %v484_v54 = vadd.f32 %v462_v49, %v380_v37 }
 0x2d7   :  { %v491_v55 = vpack.c.bf16 %v484_v54, %v483_v52 }
 0x2d8   :  { %318 = vrot.lane.b32.xlu0 %v4062_v30, %s3868_s16  ;;  %322 = vrot.lane.b32.xlu1 %v4100_v38, %s3868_s16 }
 0x2dc   :  { %300 = vrot.lane.b32.xlu0 %v281_v45, %s3879_s26  ;;  %496 = vrot.lane.b32.xlu1 %v491_v55, %s3870_s2  ;;  %v382_v45 = vmul.f32 %v4196_v27, %v4111_v42 }
 0x2e0   :  { %324 = vrot.lane.b32.xlu0 %v4111_v42, %s3868_s16  ;;  %304 = vrot.lane.b32.xlu1 %v283_v48, %s3879_s26 }
 0x2e4   :  { %302 = vrot.lane.b32.xlu0 %v282_v43, %s3879_s26  ;;  %328 = vrot.lane.b32.xlu1 %v4119_v44, %s3868_s16 }
 0x2e8   :  { %326 = vrot.lane.b32.xlu0 %v4104_v39, %s3868_s16  ;;  %306 = vrot.lane.b32.xlu1 %v284_v46, %s3879_s26 }
 0x32e   :  { %v464_v36 = vpop.permute.xlu1 %463 }
 0x32f   :  { %v485_v43 = vadd.f32 %v464_v36, %v381_v41 }
 0x332   :  { %v468_v48 = vpop.permute.xlu1 %467 }
 0x333   :  { %v487_v0 = vadd.f32 %v468_v48, %v383_v58  ;;  %v273_v58 = vmul.f32 %v4111_v42, %v4164_v59  ;;  %v274_v42 = vmul.f32 %v4104_v39, %v4148_v53 }
 0x336   :  { %v466_v56 = vpop.permute.xlu0 %465 }
 0x337   :  { %v486_v57 = vadd.f32 %v466_v56, %v382_v45 }
 0x339   :  { %v492_v62 = vpack.c.bf16 %v486_v57, %v485_v43 }
 0x33a   :  { %v470_v63 = vpop.permute.xlu0 %469  ;;  %v472_v46 = vpop.permute.xlu1 %471 }
 0x33b   :  { %v488_v3 = vadd.f32 %v470_v63, %v384_v61  ;;  %547 = vrot.lane.b32.xlu0 %v492_v62, %s3870_s2  ;;  %v489_v10 = vadd.f32 %v472_v46, %v385_v6  ;;  %v272_v63 = vmul.f32 %v4100_v38, %v4148_v53 }
 0x33d   :  { %v493_v4 = vpack.c.bf16 %v488_v3, %v487_v0 }
 0x33e   :  { %v297_v5 = vpop.permute.xlu1 %296 }
 0x33f   :  { %308 = vrot.lane.b32.xlu0 %v285_v50, %s3879_s26  ;;  %597 = vrot.lane.b32.xlu1 %v493_v4, %s3870_s2 }
 0x342   :  { %v474_v8 = vpop.permute.xlu0 %473  ;;  %v321_v9 = vpop.permute.xlu1 %320 }
 0x343   :  { %v490_v11 = vadd.f32 %v474_v8, %v386_v7  ;;  %330 = vrot.lane.b32.xlu1 %v4106_v40, %s3868_s16  ;;  %v344_v50 = vsel %vm342_vm1, %v297_v5, %v321_v9  ;;  %v275_v8 = vmul.f32 %v4119_v44, %v4164_v59 }
 0x344   :  { %v352_v16 = vmul.f32 %v344_v50, %v4166_v60 }
 0x345   :  { %v494_v13 = vpack.c.bf16 %v490_v11, %v489_v10 }
 0x346   :  { %v295_v14 = vpop.permute.xlu0 %294  ;;  %v299_v15 = vpop.permute.xlu1 %298  ;;  %v360_v24 = vadd.f32 %v352_v16, %v271_v20 }
 0x347   :  { %647 = vrot.lane.b32.xlu0 %v494_v13, %s3870_s2 }
 0x34a   :  { %v319_v17 = vpop.permute.xlu0 %318  ;;  %v323_v18 = vpop.permute.xlu1 %322 }
 0x34b   :  { %v343_v19 = vsel %vm342_vm1, %v295_v14, %v319_v17  ;;  %332 = vrot.lane.b32.xlu0 %v4128_v47, %s3868_s16  ;;  %v345_v41 = vsel %vm342_vm1, %v299_v15, %v323_v18  ;;  %v276_v17 = vmul.f32 %v4106_v40, %v4148_v53  ;;  %v277_v18 = vmul.f32 %v4128_v47, %v4164_v59 }
 0x34c   :  { %v351_v23 = vmul.f32 %v343_v19, %v4143_v51  ;;  %v353_v57 = vmul.f32 %v345_v41, %v4143_v51 }
 0x34e   :  { %v359_v25 = vadd.f32 %v351_v23, %v270_v21  ;;  %v497_v28 = vpop.permute.xlu1 %496  ;;  %v301_v32 = vpop.permute.xlu0 %300  ;;  %v361_v4 = vadd.f32 %v353_v57, %v272_v63  ;;  %v107_v21 = vld [vmem:[#allocation5 + $0x8] sm:$0xff] }
 0x34f   :  { %v503_v29 = vsel %vm498_vm3, %v497_v28, 0 }
 0x350   :  { %v367_v37 = vpack.c.bf16 %v360_v24, %v359_v25  ;;  %3300 = vmatpush3.bf16.xpose.msra.mxu1 %v503_v29 }
 0x351   :  { %3305 = vmatprep.subr.bf16.mxu1 %v3880_v26 }
 0x352   :  { %v325_v49 = vpop.permute.xlu0 %324  ;;  %v305_v30 = vpop.permute.xlu1 %304 }
 0x353   :  { %v346_v55 = vsel %vm342_vm1, %v301_v32, %v325_v49 }
 0x354   :  { %v354_v45 = vmul.f32 %v346_v55, %v4166_v60 }
 0x356   :  { %v303_v52 = vpop.permute.xlu0 %302  ;;  %v329_v54 = vpop.permute.xlu1 %328  ;;  %v362_v46 = vadd.f32 %v354_v45, %v273_v58 }
 0x357   :  { %3302 = vmatmul.mubr.msk.bf16.vlgmr.msra.gmra.mrb[0].mxu1 %vm498_vm3, %v367_v37  ;;  %v348_v62 = vsel %vm342_vm1, %v305_v30, %v329_v54 }
 0x358   :  { %3307 = vmatprep.mubr.msk.bf16.mxu1 %vm3881_vm2, %v3880_v26  ;;  %v356_v5 = vmul.f32 %v348_v62, %v4166_v60  ;;  %v368_v7 = vpack.c.bf16 %v362_v46, %v361_v4 }
 0x35a   :  { %v327_v36 = vpop.permute.xlu0 %326  ;;  %v307_v56 = vpop.permute.xlu1 %306  ;;  %v364_v10 = vadd.f32 %v356_v5, %v275_v8 }
 0x35b   :  { %v347_v48 = vsel %vm342_vm1, %v303_v52, %v327_v36 }
 0x35c   :  { %v355_v0 = vmul.f32 %v347_v48, %v4143_v51 }
 0x35e   :  { %v363_v38 = vadd.f32 %v355_v0, %v274_v42 }
 0x360   :  { %v369_v13 = vpack.c.bf16 %v364_v10, %v363_v38 }
 0x3ad   :  { %v548_v43 = vpop.permute.xlu0 %547 }
 0x3ae   :  { %v553_v61 = vsel %vm498_vm3, %v548_v43, 0 }
 0x3af   :  { %3306 = vmatpush3.bf16.xpose.msra.mxu1 %v553_v61 }
 0x3b0   :  { %3317 = vmatprep.subr.bf16.mxu1 %v3880_v26 }
 0x3b1   :  { %v598_v3 = vpop.permute.xlu1 %597  ;;  %v309_v9 = vpop.permute.xlu0 %308 }
 0x3b2   :  { %v603_v6 = vsel %vm498_vm3, %v598_v3, 0 }
 0x3b3   :  { %3312 = vmatpush3.bf16.xpose.msra.mxu0 %v603_v6 }
 0x3b4   :  { %3323 = vmatprep.subr.bf16.mxu0 %v3880_v26 }
 0x3b5   :  { %v331_v11 = vpop.permute.xlu1 %330 }
 0x3b6   :  { %3308 = vmatmul.mubr.msk.bf16.vlgmr.msra.gmra.mrb[4].mxu1 %vm498_vm3, %v368_v7  ;;  %v349_v14 = vsel %vm342_vm1, %v307_v56, %v331_v11 }
 0x3b7   :  { %3319 = vmatprep.mubr.msk.bf16.mxu1 %vm3881_vm2, %v3880_v26  ;;  %v357_v44 = vmul.f32 %v349_v14, %v4143_v51  ;;  %v106_v51 = vld [vmem:[#allocation5] sm:$0xff] }
 0x3b9   :  { %v648_v39 = vpop.permute.xlu0 %647  ;;  %v365_v33 = vadd.f32 %v357_v44, %v276_v17 }
 0x3ba   :  { %v653_v15 = vsel %vm498_vm3, %v648_v39, 0  ;;  %3314 = vmatmul.mubr.msk.bf16.vlgmr.msra.gmra.mrb[4].mxu0 %vm498_vm3, %v369_v13 }
 0x3bb   :  { %3318 = vmatpush3.bf16.xpose.msra.mxu1 %v653_v15  ;;  %3324 = vmatpush3.bf16.msra.mxu0 %v788_v34 }
 0x3bc   :  { %3325 = vmatprep.mubr.msk.bf16.mxu0 %vm3881_vm2, %v3880_v26  ;;  %3335 = vmatprep.subr.bf16.mxu0 %v3880_v26 }
 0x3bd   :  { %v333_v50 = vpop.permute.xlu0 %332  ;;  %3329 = vmatprep.subr.bf16.mxu1 %v3880_v26 }
 0x3be   :  { %v350_v16 = vsel %vm342_vm1, %v309_v9, %v333_v50 }
 0x3bf   :  { %v358_v31 = vmul.f32 %v350_v16, %v4166_v60 }
 0x3c1   :  { %v366_v34 = vadd.f32 %v358_v31, %v277_v18 }
 0x3c3   :  { %v370_v19 = vpack.c.bf16 %v366_v34, %v365_v33 }
 0x3c5   :  { %3320 = vmatmul.mubr.msk.bf16.vlgmr.msra.gmra.mrb[8].mxu1 %vm498_vm3, %v370_v19 }
 0x3c6   :  { %3331 = vmatprep.mubr.msk.bf16.mxu1 %vm3881_vm2, %v3880_v26 }
 0x42a   :  { %v539_v20 = vpop.f32.mrb[0].mxu1 }
 0x42b   :  { %v540_v23 = vadd.f32 %v539_v20, %v106_v51  ;;  %v3303_v24 = vpop.f32.mrb[1].mxu1 }
 0x42c   :  { %v542_v25 = vpop.f32.mrb[2].mxu1 }
 0x42d   :  { %v543_v40 = vadd.f32 %v542_v25, %v107_v21  ;;  %v3304_v53 = vpop.f32.mrb[3].mxu1  ;;  %v696_v47 = vsel %vm498_vm3, %v540_v23, -inf }
 0x42e   :  { %697 = vmax.xlane.f32.xlu1 %v696_v47 }
 0x42f   :  { %v699_v59 = vsel %vm498_vm3, %v543_v40, -inf }
 0x430   :  { %700 = vmax.xlane.f32.xlu0 %v699_v59 }
 0x489   :  { %v589_v60 = vpop.f32.mrb[4].mxu1 }
 0x48a   :  { %v590_v28 = vadd.f32 %v589_v60, %v106_v51  ;;  %v3309_v29 = vpop.f32.mrb[5].mxu1 }
 0x48b   :  { %v592_v37 = vpop.f32.mrb[6].mxu1 }
 0x48c   :  { %v593_v32 = vadd.f32 %v592_v37, %v107_v21  ;;  %v3310_v49 = vpop.f32.mrb[7].mxu1  ;;  %v702_v30 = vsel %vm498_vm3, %v590_v28, -inf }
 0x48d   :  { %703 = vmax.xlane.f32.xlu0 %v702_v30  ;;  %v639_v52 = vpop.f32.mrb[4].mxu0 }
 0x48e   :  { %v640_v54 = vadd.f32 %v639_v52, %v106_v51  ;;  %v3315_v55 = vpop.f32.mrb[5].mxu0  ;;  %v705_v36 = vsel %vm498_vm3, %v593_v32, -inf }
 0x48f   :  { %706 = vmax.xlane.f32.xlu1 %v705_v36  ;;  %v642_v41 = vpop.f32.mrb[6].mxu0 }
 0x490   :  { %v643_v45 = vadd.f32 %v642_v41, %v107_v21  ;;  %v3316_v48 = vpop.f32.mrb[7].mxu0  ;;  %v708_v56 = vsel %vm498_vm3, %v640_v54, -inf }
 0x491   :  { %709 = vmax.xlane.f32.xlu0 %v708_v56 }
 0x492   :  { %v711_v43 = vsel %vm498_vm3, %v643_v45, -inf }
 0x493   :  { %712 = vmax.xlane.f32.xlu1 %v711_v43 }
 0x498   :  { %v689_v57 = vpop.f32.mrb[8].mxu1 }
 0x499   :  { %v690_v58 = vadd.f32 %v689_v57, %v106_v51  ;;  %v3321_v61 = vpop.f32.mrb[9].mxu1 }
 0x49a   :  { %v692_v62 = vpop.f32.mrb[10].mxu1 }
 0x49b   :  { %v693_v63 = vadd.f32 %v692_v62, %v107_v21  ;;  %v3322_v46 = vpop.f32.mrb[11].mxu1  ;;  %v714_v0 = vsel %vm498_vm3, %v690_v58, -inf }
 0x49c   :  { %715 = vmax.xlane.f32.xlu0 %v714_v0 }
 0x49d   :  { %v717_v3 = vsel %vm498_vm3, %v693_v63, -inf }
 0x49e   :  { %718 = vmax.xlane.f32.xlu1 %v717_v3 }
 0x4bb   :  { %v698_v4 = vpop.xlane.xlu1 %697 }
 0x4bc   :  { %v720_v5 = vsub.f32 %v540_v23, %v698_v4 }
 0x4bd   :  { %v701_v42 = vpop.xlane.xlu0 %700 }
 0x4be   :  { %v728_v6 = vmul.f32 1.442695, %v720_v5  ;;  %v721_v7 = vsub.f32 %v543_v40, %v701_v42 }
 0x4c0   :  { %3629 = vpow2.f32 %v728_v6  ;;  %v730_v8 = vmul.f32 1.442695, %v721_v7 }
 0x4c2   :  { %3631 = vpow2.f32 %v730_v8 }
 0x4ca   :  { %v3630_v38 = vpop.eup %3629 }
 0x4cb   :  { %v744_v9 = vsel %vm498_vm3, %v3630_v38, 0.0 }
 0x4cc   :  { %v3632_v10 = vpop.eup %3631  ;;  %745 = vadd.xlane.f32.xlu0 %v744_v9 }
 0x4cd   :  { %v747_v11 = vsel %vm498_vm3, %v3632_v10, 0.0 }
 0x4ce   :  { %748 = vadd.xlane.f32.xlu1 %v747_v11 }
 0x51a   :  { %v704_v13 = vpop.xlane.xlu0 %703 }
 0x51b   :  { %v722_v39 = vsub.f32 %v590_v28, %v704_v13 }
 0x51c   :  { %v707_v14 = vpop.xlane.xlu1 %706 }
 0x51d   :  { %v732_v15 = vmul.f32 1.442695, %v722_v39  ;;  %v723_v44 = vsub.f32 %v593_v32, %v707_v14 }
 0x51e   :  { %v710_v50 = vpop.xlane.xlu0 %709 }
 0x51f   :  { %3633 = vpow2.f32 %v732_v15  ;;  %v734_v16 = vmul.f32 1.442695, %v723_v44  ;;  %v724_v17 = vsub.f32 %v640_v54, %v710_v50 }
 0x520   :  { %v713_v18 = vpop.xlane.xlu1 %712 }
 0x521   :  { %3635 = vpow2.f32 %v734_v16  ;;  %v736_v31 = vmul.f32 1.442695, %v724_v17  ;;  %v725_v33 = vsub.f32 %v643_v45, %v713_v18 }
 0x523   :  { %3637 = vpow2.f32 %v736_v31  ;;  %v738_v34 = vmul.f32 1.442695, %v725_v33 }
 0x525   :  { %3639 = vpow2.f32 %v738_v34 }
 0x529   :  { %v4326_v19 = vpop.eup %3633  ;;  %v716_v51 = vpop.xlane.xlu0 %715 }
 0x52a   :  { %v726_v20 = vsub.f32 %v690_v58, %v716_v51  ;;  %v750_v21 = vsel %vm498_vm3, %v4326_v19, 0.0 }
 0x52b   :  { %v3636_v23 = vpop.eup %3635  ;;  %751 = vadd.xlane.f32.xlu0 %v750_v21  ;;  %v719_v29 = vpop.xlane.xlu1 %718 }
 0x52c   :  { %v740_v24 = vmul.f32 1.442695, %v726_v20  ;;  %v753_v25 = vsel %vm498_vm3, %v3636_v23, 0.0  ;;  %v727_v37 = vsub.f32 %v693_v63, %v719_v29 }
 0x52d   :  { %v3638_v40 = vpop.eup %3637  ;;  %754 = vadd.xlane.f32.xlu1 %v753_v25 }
 0x52e   :  { %3641 = vpow2.f32 %v740_v24  ;;  %v756_v53 = vsel %vm498_vm3, %v3638_v40, 0.0  ;;  %v742_v32 = vmul.f32 1.442695, %v727_v37 }
 0x52f   :  { %v3640_v47 = vpop.eup %3639  ;;  %757 = vadd.xlane.f32.xlu0 %v756_v53 }
 0x530   :  { %v759_v59 = vsel %vm498_vm3, %v3640_v47, 0.0  ;;  %3643 = vpow2.f32 %v742_v32 }
 0x531   :  { %760 = vadd.xlane.f32.xlu1 %v759_v59 }
 0x538   :  { %v4333_v60 = vpop.eup %3641 }
 0x539   :  { %v762_v28 = vsel %vm498_vm3, %v4333_v60, 0.0 }
 0x53a   :  { %763 = vadd.xlane.f32.xlu0 %v762_v28  ;;  %v3644_v52 = vpop.eup %3643  ;;  %v3515_v28 = vld [vmem:[#allocation7 + $0x10] sm:$0xff]  }
 0x53b   :  { %v765_v55 = vsel %vm498_vm3, %v3644_v52, 0.0 }
 0x542   :  { %3447 = vrot.lane.b32.xlu1 %v4078_v35, %s3874_s30 }
 0x550   :  { %3442 = vrot.lane.b32.xlu0 %v4078_v35, %s3875_s20 }
 0x559   :  { %v746_v49 = vpop.xlane.xlu0 %745 }
 0x55a   :  { %3645 = vrcp.f32 %v746_v49 }
 0x55b   :  { %v749_v30 = vpop.xlane.xlu1 %748 }
 0x55c   :  { %3647 = vrcp.f32 %v749_v30  ;;  %v3516_v30 = vld [vmem:[#allocation7 + $0x18] sm:$0xff]  }
 0x564   :  { %v3646_v54 = vpop.eup %3645 }
 0x565   :  { %v776_v41 = vmul.f32 %v3646_v54, %v3630_v38 }
 0x566   :  { %v3648_v36 = vpop.eup %3647  ;;  %766 = vadd.xlane.f32.xlu1 %v765_v55 }
 0x567   :  { %v777_v45 = vmul.f32 %v3648_v36, %v3632_v10 }
 0x569   :  { %v784_v48 = vpack.c.bf16 %v777_v45, %v776_v41 }
 0x56b   :  { %3326 = vmatmul.mubr.msk.bf16.vlgmr.msra.gmra.mrb[8].mxu0 %vm498_vm3, %v784_v48 }
 0x56c   :  { %3337 = vmatprep.mubr.msk.bf16.mxu0 %vm3881_vm2, %v3880_v26 }
 0x577   :  { %3452 = vrot.lane.b32.xlu1 %v4078_v35, %s3876_s21 }
 0x5b8   :  { %v752_v56 = vpop.xlane.xlu0 %751 }
 0x5ba   :  { %v755_v43 = vpop.xlane.xlu1 %754 }
 0x5bc   :  { %v758_v57 = vpop.xlane.xlu0 %757 }
 0x5bd   :  { %3649 = vrcp.f32 %v758_v57 }
 0x5be   :  { %v761_v58 = vpop.xlane.xlu1 %760 }
 0x5bf   :  { %3651 = vrcp.f32 %v761_v58 }
 0x5c0   :  { %3653 = vrcp.f32 %v755_v43 }
 0x5c1   :  { %3655 = vrcp.f32 %v752_v56 }
 0x5c2   :  { %v3448_v61 = vpop.permute.xlu1 %3447 }
 0x5c3   :  { %v3450_v62 = vunpack.i.h.bf16 %v3448_v61  ;;  %v3449_v63 = vunpack.i.l.bf16 %v3448_v61 }
 0x5c5   :  { %v790_v46 = vpack.c.bf16 %v3450_v62, %v3449_v63 }
 0x5c7   :  { %v3650_v0 = vpop.eup %3649  ;;  %v764_v3 = vpop.xlane.xlu0 %763  ;;  %3336 = vmatpush3.bf16.msra.mxu0 %v790_v46 }
 0x5c8   :  { %3347 = vmatprep.subr.bf16.mxu0 %v3880_v26  ;;  %v780_v35 = vmul.f32 %v3650_v0, %v3638_v40  ;;  %3657 = vrcp.f32 %v764_v3  ;;  %v3514_v40 = vld [vmem:[#allocation7 + $0x8] sm:$0xff]  }
 0x5c9   :  { %v3652_v4 = vpop.eup %3651 }
 0x5ca   :  { %v3654_v5 = vpop.eup %3653  ;;  %v781_v42 = vmul.f32 %v3652_v4, %v3640_v47 }
 0x5cb   :  { %v3443_v6 = vpop.permute.xlu0 %3442  ;;  %v3656_v7 = vpop.eup %3655  ;;  %v779_v10 = vmul.f32 %v3654_v5, %v3636_v23  ;;  %v3513_v23 = vld [vmem:[#allocation7] sm:$0xff]  }
 0x5cc   :  { %v3445_v8 = vunpack.i.h.bf16 %v3443_v6  ;;  %v3444_v38 = vunpack.i.l.bf16 %v3443_v6  ;;  %v786_v9 = vpack.c.bf16 %v781_v42, %v780_v35  ;;  %v778_v13 = vmul.f32 %v3656_v7, %v4326_v19 }
 0x5ce   :  { %v789_v11 = vpack.c.bf16 %v3445_v8, %v3444_v38  ;;  %3338 = vmatmul.mubr.msk.bf16.vlgmr.msra.gmra.mrb[12].mxu0 %vm498_vm3, %v786_v9  ;;  %v785_v39 = vpack.c.bf16 %v779_v10, %v778_v13 }
 0x5cf   :  { %3355 = vmatprep.mubr.msk.bf16.mxu0 %vm3881_vm2, %v3880_v26  ;;  %3348 = vmatpush3.bf16.msra.mxu0 %v3513_v23  ;;  %v3540_v23 = vld [vmem:[%s4979_s8 + $0x6c] ss:$16 sps:$4 sm:$0xff]  }
 0x5d0   :  { %3330 = vmatpush3.bf16.msra.mxu1 %v789_v11  ;;  %3349 = vmatprep.subr.bf16.mxu0 %v3880_v26 }
 0x5d1   :  { %3341 = vmatprep.subr.bf16.mxu1 %v3880_v26 }
 0x5d2   :  { %v3658_v17 = vpop.eup %3657 }
 0x5d3   :  { %3332 = vmatmul.mubr.msk.bf16.vlgmr.msra.gmra.mrb[12].mxu1 %vm498_vm3, %v785_v39  ;;  %v782_v31 = vmul.f32 %v3658_v17, %v4333_v60  ;;  %3350 = vmatpush3.bf16.msra.mxu0 %v3514_v40  ;;  %v3523_v17 = vld [vmem:[%s4979_s8 + $0x20] ss:$16 sps:$4 sm:$0xff]  }
 0x5d4   :  { %3343 = vmatprep.mubr.msk.bf16.mxu1 %vm3881_vm2, %v3880_v26  ;;  %3351 = vmatprep.subr.bf16.mxu0 %v3880_v26 }
 0x5d7   :  { %3352 = vmatpush3.bf16.msra.mxu0 %v3515_v28 }
 0x5d8   :  { %3353 = vmatprep.subr.bf16.mxu0 %v3880_v26 }
 0x5db   :  { %3354 = vmatpush3.bf16.msra.mxu0 %v3516_v30 }
 0x5f3   :  { %v767_v14 = vpop.xlane.xlu1 %766 }
 0x5f4   :  { %3659 = vrcp.f32 %v767_v14 }
 0x5f7   :  { %v3453_v15 = vpop.permute.xlu1 %3452 }
 0x5f8   :  { %v3455_v44 = vunpack.i.h.bf16 %v3453_v15  ;;  %v3454_v50 = vunpack.i.l.bf16 %v3453_v15  ;;  %v3517_v15 = vld [vmem:[%s4979_s8] ss:$16 sps:$4 sm:$0xff]  }
 0x5fa   :  { %v791_v16 = vpack.c.bf16 %v3455_v44, %v3454_v50  ;;  %v3520_v44 = vld [vmem:[%s4979_s8 + $0x8] ss:$16 sps:$4 sm:$0xff]   ;;  %v3525_v50 = vld [vmem:[%s4979_s8 + $0x24] ss:$16 sps:$4 sm:$0xff]  }
 0x5fc   :  { %3342 = vmatpush3.bf16.msra.mxu1 %v791_v16  ;;  %v3528_v16 = vld [vmem:[%s4979_s8 + $0x2c] ss:$16 sps:$4 sm:$0xff]  }
 0x5fe   :  { %v3660_v18 = vpop.eup %3659 }
 0x5ff   :  { %v783_v33 = vmul.f32 %v3660_v18, %v3644_v52  ;;  %v3526_v18 = vld [vmem:[%s4979_s8 + $0x28] ss:$16 sps:$4 sm:$0xff]  }
 0x601   :  { %v787_v34 = vpack.c.bf16 %v783_v33, %v782_v31  ;;  %v3531_v31 = vld [vmem:[%s4979_s8 + $0x44] ss:$16 sps:$4 sm:$0xff]   ;;  %v3534_v33 = vld [vmem:[%s4979_s8 + $0x4c] ss:$16 sps:$4 sm:$0xff]  }
 0x603   :  { %3344 = vmatmul.mubr.msk.bf16.vlgmr.msra.gmra.mrb[16].mxu1 %vm498_vm3, %v787_v34  ;;  %v3529_v34 = vld [vmem:[%s4979_s8 + $0x40] ss:$16 sps:$4 sm:$0xff]  }
 0x604   :  { %1236 = vmatprep.mubr.bf16.mxu1 %v3873_v12 }
 0x63e   :  { %v829_v19 = vpop.f32.mrb[8].mxu0 }
 0x63f   :  { %v3327_v51 = vpop.f32.mrb[9].mxu0 }
 0x640   :  { %v832_v20 = vpop.f32.mrb[10].mxu0  ;;  %v3535_v51 = vld [vmem:[%s4979_s8 + $0x60] ss:$16 sps:$4 sm:$0xff]  }
 0x641   :  { %v3328_v21 = vpop.f32.mrb[11].mxu0 }
 0x642   :  { %v3538_v21 = vld [vmem:[%s4979_s8 + $0x68] ss:$16 sps:$4 sm:$0xff]  }
 0x6a1   :  { %v917_v24 = vpop.f32.mrb[12].mxu0 }
 0x6a2   :  { %v3339_v25 = vpop.f32.mrb[13].mxu0 }
 0x6a3   :  { %v920_v53 = vpop.f32.mrb[14].mxu0 }
 0x6a4   :  { %v3461_v47 = vpack.i.bf16 %v920_v53, %v917_v24  ;;  %v3340_v59 = vpop.f32.mrb[15].mxu0 }
 0x6a6   :  { %v873_v60 = vpop.f32.mrb[12].mxu1  ;;  %3462 = vrot.lane.b32.xlu1 %v3461_v47, %s3882_s27 }
 0x6a7   :  { %v3333_v29 = vpop.f32.mrb[13].mxu1 }
 0x6a8   :  { %v876_v37 = vpop.f32.mrb[14].mxu1 }
 0x6a9   :  { %v3456_v32 = vpack.i.bf16 %v876_v37, %v873_v60  ;;  %v3334_v49 = vpop.f32.mrb[15].mxu1  ;;  %v3040_v37 = vld [vmem:[%s4976_s5] ss:$0 sm:$0xff] }
 0x6ab   :  { %3457 = vrot.lane.b32.xlu0 %v3456_v32, %s3883_s28 }
 0x6d6   :  { %v961_v52 = vpop.f32.mrb[16].mxu1 }
 0x6d7   :  { %v3345_v54 = vpop.f32.mrb[17].mxu1 }
 0x6d8   :  { %v964_v55 = vpop.f32.mrb[18].mxu1  ;;  %v3541_v54 = vld [vmem:[%s4980_s9 + $0x40] sm:$0xff]  }
 0x6d9   :  { %v3466_v36 = vpack.i.bf16 %v964_v55, %v961_v52  ;;  %v3346_v41 = vpop.f32.mrb[19].mxu1  ;;  %v3542_v55 = vld [vmem:[%s4980_s9] sm:$0xff]  }
 0x6da   :  { %v3544_v41 = vld [vmem:[%s4980_s9 + $0x8] sm:$0xff]  }
 0x6db   :  { %3467 = vrot.lane.b32.xlu0 %v3466_v36, %s3884_s3  ;;  %v3543_v36 = vld [vmem:[%s4980_s9 + $0x48] sm:$0xff]  }
 0x718   :  { %v3463_v43 = vpop.permute.xlu1 %3462 }
 0x719   :  { %v3465_v61 = vunpack.i.h.bf16 %v3463_v43  ;;  %v3464_v62 = vunpack.i.l.bf16 %v3463_v43  ;;  %v3548_v43 = vld [vmem:[%s4980_s9 + $0x18] sm:$0xff]  }
 0x71d   :  { %v3458_v45 = vpop.permute.xlu0 %3457 }
 0x71e   :  { %v3460_v48 = vunpack.i.h.bf16 %v3458_v45  ;;  %v3459_v56 = vunpack.i.l.bf16 %v3458_v45  ;;  %v3545_v45 = vld [vmem:[%s4980_s9 + $0x50] sm:$0xff]  }
 0x720   :  { %v992_v57 = vsel %vm498_vm3, %v829_v19, %v3459_v56  ;;  %v993_v58 = vsel %vm498_vm3, %v832_v20, %v3460_v48  ;;  %v3532_v19 = vld [vmem:[%s4979_s8 + $0x48] ss:$16 sps:$4 sm:$0xff]   ;;  %v3537_v20 = vld [vmem:[%s4979_s8 + $0x64] ss:$16 sps:$4 sm:$0xff]  }
 0x721   :  { %v995_v3 = vsel %vm994_vm4, %v992_v57, %v3464_v62  ;;  %v996_v4 = vsel %vm994_vm4, %v993_v58, %v3465_v61  ;;  %v3546_v48 = vld [vmem:[%s4980_s9 + $0x10] sm:$0xff]   ;;  %v3547_v56 = vld [vmem:[%s4980_s9 + $0x58] sm:$0xff]   ;;  %v3549_v57 = vld [vmem:[%s4980_s9 + $0x60] sm:$0xff]  }
 0x722   :  { %v3550_v58 = vld [vmem:[%s4980_s9 + $0x20] sm:$0xff]   ;;  %v3551_v61 = vld [vmem:[%s4980_s9 + $0x68] sm:$0xff]  }
 0x723   :  { %v3552_v62 = vld [vmem:[%s4980_s9 + $0x28] sm:$0xff]  }
 0x74d   :  { %v3468_v63 = vpop.permute.xlu0 %3467 }
 0x74e   :  { %v3470_v46 = vunpack.i.h.bf16 %v3468_v63  ;;  %v3469_v0 = vunpack.i.l.bf16 %v3468_v63  ;;  %v3553_v63 = vld [vmem:[%s4980_s9 + $0x70] sm:$0xff]  }
 0x750   :  { %v998_v5 = vsel %vm997_vm5, %v995_v3, %v3469_v0  ;;  %v999_v35 = vsel %vm997_vm5, %v996_v4, %v3470_v46  ;;  %v3554_v46 = vld [vmem:[%s4980_s9 + $0x30] sm:$0xff]   ;;  %v3555_v0 = vld [vmem:[%s4980_s9 + $0x78] sm:$0xff]  }
 0x751   :  { %v1000_v42 = vpack.c.bf16 %v999_v35, %v998_v5  ;;  %v3556_v3 = vld [vmem:[%s4980_s9 + $0x38] sm:$0xff]  }
 0x753   :  { %3356 = vmatmul.mubr.msk.bf16.vlgmr.msra.gmra.mrb[16].mxu0 %vm111_vm0, %v1000_v42 }
 0x754   :  { %1279 = vmatprep.mubr.bf16.mxu0 %v3873_v12 }
 0x826   :  { %v1070_v6 = vpop.f32.mrb[16].mxu0 }
 0x827   :  { %v4374_v7 = vadd.f32 %v4021_v1, %v1070_v6  ;;  %v3357_v8 = vpop.f32.mrb[17].mxu0  ;;  %v3519_v1 = vld [vmem:[%s4979_s8 + $0x4] ss:$16 sps:$4 sm:$0xff]  }
 0x828   :  { %v1073_v38 = vpop.f32.mrb[18].mxu0  ;;  %1204 = vmatprep.subr.bf16.mxu1 %v3519_v1 }
 0x829   :  { %v4377_v9 = vadd.f32 %v4023_v2, %v1073_v38  ;;  %v3358_v10 = vpop.f32.mrb[19].mxu0  ;;  %v1080_v11 = vmul.f32 %v4374_v7, %v4374_v7  ;;  %v3522_v2 = vld [vmem:[%s4979_s8 + $0xc] ss:$16 sps:$4 sm:$0xff]   ;;  %1205 = vmatpush1.bf16.msra.mxu1 %v3517_v15 }
 0x82a   :  { %1247 = vmatprep.subr.bf16.mxu0 %v3522_v2  ;;  %1206 = vmatprep.subr.bf16.mxu1 %v3525_v50 }
 0x82b   :  { %v1082_v13 = vsel %vm111_vm0, %v1080_v11, 0.0  ;;  %v1081_v39 = vmul.f32 %v4377_v9, %v4377_v9  ;;  %1248 = vmatpush1.bf16.msra.mxu0 %v3520_v44 }
 0x82c   :  { %1083 = vadd.xlane.f32.xlu1 %v1082_v13  ;;  %1249 = vmatprep.subr.bf16.mxu0 %v3528_v16 }
 0x82d   :  { %v1085_v14 = vsel %vm111_vm0, %v1081_v39, 0.0  ;;  %1207 = vmatpush1.bf16.msra.mxu1 %v3523_v17 }
 0x82e   :  { %1086 = vadd.xlane.f32.xlu0 %v1085_v14  ;;  %1208 = vmatprep.subr.bf16.mxu1 %v3531_v31 }
 0x82f   :  { %1250 = vmatpush1.bf16.msra.mxu0 %v3526_v18 }
 0x830   :  { %1251 = vmatprep.subr.bf16.mxu0 %v3534_v33 }
 0x831   :  { %1209 = vmatpush1.bf16.msra.mxu1 %v3529_v34 }
 0x832   :  { %1210 = vmatprep.subr.bf16.mxu1 %v3537_v20 }
 0x833   :  { %1252 = vmatpush1.bf16.msra.mxu0 %v3532_v19 }
 0x834   :  { %1253 = vmatprep.subr.bf16.mxu0 %v3540_v23 }
 0x835   :  { %1211 = vmatpush1.bf16.msra.mxu1 %v3535_v51 }
 0x836   :  { %3234 = vmatprep.subr.bf16.mxu1 %v3541_v54 }
 0x837   :  { %1254 = vmatpush1.bf16.msra.mxu0 %v3538_v21 }
 0x8b9   :  { %v1084_v24 = vpop.xlane.xlu1 %1083 }
 0x8ba   :  { %v1088_v25 = vmul.f32 0.015625, %v1084_v24 }
 0x8bb   :  { %v1087_v40 = vpop.xlane.xlu0 %1086 }
 0x8bc   :  { %v1090_v53 = vadd.f32 1e-05, %v1088_v25  ;;  %v1089_v47 = vmul.f32 0.015625, %v1087_v40 }
 0x8be   :  { %3661 = vrsqrt.f32 %v1090_v53  ;;  %v1091_v59 = vadd.f32 1e-05, %v1089_v47 }
 0x8c0   :  { %3663 = vrsqrt.f32 %v1091_v59 }
 0x8c8   :  { %v3662_v60 = vpop.eup %3661 }
 0x8c9   :  { %v1094_v28 = vmul.f32 %v3662_v60, %v4374_v7 }
 0x8ca   :  { %v3664_v29 = vpop.eup %3663 }
 0x8cb   :  { %v1095_v32 = vmul.f32 %v3664_v29, %v4377_v9  ;;  %v1102_v49 = vmul.f32 %v3040_v37, %v1094_v28 }
 0x8cd   :  { %v1103_v30 = vmul.f32 %v3040_v37, %v1095_v32 }
 0x8cf   :  { %v1104_v52 = vpack.c.bf16 %v1103_v30, %v1102_v49 }
 0x8d1   :  { %3057 = vmatmul.mubr.msk.bf16.vlgmr.msra.gmra.mrb[20].mxu1 %vm111_vm0, %v1104_v52  ;;  %3058 = vmatmul.mubr.msk.bf16.vlgmr.msra.gmra.mrb[20].mxu0 %vm111_vm0, %v1104_v52 }
 0x8d2   :  { %1606 = vmatprep.mubr.bf16.mxu0 %v3873_v12  ;;  %3235 = vmatpush3.bf16.msra.mxu1 %v3542_v55 }
 0x8d3   :  { %3236 = vmatprep.subr.bf16.mxu1 %v3543_v36 }
 0x8d6   :  { %3237 = vmatpush3.bf16.msra.mxu1 %v3544_v41 }
 0x8d7   :  { %3238 = vmatprep.subr.bf16.mxu1 %v3545_v45  ;;  %v3562_v45 = vld [vmem:[%s4977_s6 + $0x54] ss:$8 sps:$4 sm:$0xff]  }
 0x8da   :  { %3239 = vmatpush3.bf16.msra.mxu1 %v3546_v48  ;;  %v3560_v48 = vld [vmem:[%s4977_s6 + $0x50] ss:$8 sps:$4 sm:$0xff]  }
 0x8db   :  { %3240 = vmatprep.subr.bf16.mxu1 %v3547_v56  ;;  %v3565_v56 = vld [vmem:[%s4977_s6 + $0x64] ss:$8 sps:$4 sm:$0xff]  }
 0x8de   :  { %3241 = vmatpush3.bf16.msra.mxu1 %v3548_v43  ;;  %v3563_v43 = vld [vmem:[%s4977_s6 + $0x60] ss:$8 sps:$4 sm:$0xff]  }
 0x8df   :  { %3242 = vmatprep.subr.bf16.mxu1 %v3549_v57  ;;  %v3566_v57 = vld [vmem:[%s4977_s6 + $0x70] ss:$8 sps:$4 sm:$0xff]  }
 0x8e2   :  { %3243 = vmatpush3.bf16.msra.mxu1 %v3550_v58  ;;  %v3568_v58 = vld [vmem:[%s4977_s6 + $0x74] ss:$8 sps:$4 sm:$0xff]  }
 0x8e3   :  { %3244 = vmatprep.subr.bf16.mxu1 %v3551_v61 }
 0x8e6   :  { %3245 = vmatpush3.bf16.msra.mxu1 %v3552_v62 }
 0x8e7   :  { %3246 = vmatprep.subr.bf16.mxu1 %v3553_v63 }
 0x8ea   :  { %3247 = vmatpush3.bf16.msra.mxu1 %v3554_v46 }
 0x8eb   :  { %3248 = vmatprep.subr.bf16.mxu1 %v3555_v0 }
 0x8ee   :  { %3249 = vmatpush3.bf16.msra.mxu1 %v3556_v3 }
 0x8ef   :  { %3365 = vmatprep.subr.bf16.mxu1 %v3880_v26 }
 0x9a4   :  { %v1238_v4 = vpop.f32.mrb[20].mxu1  ;;  %v1281_v5 = vpop.f32.mrb[20].mxu0 }
 0x9a5   :  { %v3059_v35 = vmul.f32 -1.442695, %v1238_v4  ;;  %v1240_v42 = vpop.f32.mrb[21].mxu1  ;;  %v1283_v6 = vpop.f32.mrb[21].mxu0 }
 0x9a6   :  { %v3060_v8 = vmul.f32 -1.442695, %v1240_v42  ;;  %v1242_v38 = vpop.f32.mrb[22].mxu1  ;;  %v1285_v10 = vpop.f32.mrb[22].mxu0 }
 0x9a7   :  { %3665 = vpow2.f32 %v3059_v35  ;;  %v3061_v11 = vmul.f32 -1.442695, %v1242_v38  ;;  %v1244_v13 = vpop.f32.mrb[23].mxu1  ;;  %v1287_v39 = vpop.f32.mrb[23].mxu0 }
 0x9a8   :  { %3667 = vpow2.f32 %v3060_v8  ;;  %v3062_v14 = vmul.f32 -1.442695, %v1244_v13 }
 0x9a9   :  { %3669 = vpow2.f32 %v3061_v11 }
 0x9aa   :  { %3671 = vpow2.f32 %v3062_v14 }
 0x9b1   :  { %v3666_v1 = vpop.eup %3665 }
 0x9b2   :  { %v3668_v2 = vpop.eup %3667  ;;  %v1302_v15 = vadd.f32 1.0, %v3666_v1 }
 0x9b3   :  { %v3670_v44 = vpop.eup %3669  ;;  %v1303_v50 = vadd.f32 1.0, %v3668_v2 }
 0x9b4   :  { %v3672_v16 = vpop.eup %3671  ;;  %3673 = vrcp.f32 %v1302_v15  ;;  %v1304_v17 = vadd.f32 1.0, %v3670_v44 }
 0x9b5   :  { %3675 = vrcp.f32 %v1303_v50  ;;  %v1305_v18 = vadd.f32 1.0, %v3672_v16 }
 0x9b6   :  { %3677 = vrcp.f32 %v1304_v17 }
 0x9b7   :  { %3679 = vrcp.f32 %v1305_v18 }
 0x9be   :  { %v3674_v31 = vpop.eup %3673 }
 0x9bf   :  { %v3676_v33 = vpop.eup %3675  ;;  %v1314_v34 = vmul.f32 %v3674_v31, %v1238_v4 }
 0x9c0   :  { %v3678_v19 = vpop.eup %3677  ;;  %v1315_v51 = vmul.f32 %v3676_v33, %v1240_v42  ;;  %v3080_v42 = vld [vmem:[%s4975_s4 + $0x1] ss:$0 sm:$0xff] }
 0x9c1   :  { %v3680_v20 = vpop.eup %3679  ;;  %v1318_v21 = vmul.f32 %v1314_v34, %v1281_v5  ;;  %v1316_v23 = vmul.f32 %v3678_v19, %v1242_v38 }
 0x9c2   :  { %v1319_v24 = vmul.f32 %v1315_v51, %v1283_v6  ;;  %v1317_v25 = vmul.f32 %v3680_v20, %v1244_v13 }
 0x9c3   :  { %v1320_v40 = vmul.f32 %v1316_v23, %v1285_v10 }
 0x9c4   :  { %v1321_v53 = vmul.f32 %v1317_v25, %v1287_v39 }
 0x9c5   :  { %v1322_v47 = vpack.c.bf16 %v1320_v40, %v1318_v21 }
 0x9c6   :  { %v1323_v59 = vpack.c.bf16 %v1321_v53, %v1319_v24 }
 0x9c8   :  { %1484 = vmatprep.mubr.bf16.mxu1 %v1323_v59 }
 0x9c9   :  { %1485 = vmatmul.mubr.bf16.vlgmr.msra.gmra.mrb[24].mxu1 %v1322_v47 }
 0x9ca   :  { %3367 = vmatprep.mubr.msk.bf16.mxu1 %vm3881_vm2, %v3880_v26 }
 0xa9c   :  { %v3250_v60 = vpop.f32.mrb[24].mxu1 }
 0xa9d   :  { %v3251_v28 = vpop.f32.mrb[25].mxu1 }
 0xa9e   :  { %v3252_v29 = vadd.f32 %v3251_v28, %v3250_v60  ;;  %v3253_v37 = vpop.f32.mrb[26].mxu1  ;;  %v4625_v60 = vld [vmem:[#allocation2 + $0x8] sm:$0xff] }
 0xa9f   :  { %v3254_v32 = vpop.f32.mrb[27].mxu1 }
 0xaa0   :  { %v4493_v49 = vadd.f32 %v3252_v29, %v4374_v7  ;;  %v3255_v30 = vadd.f32 %v3254_v32, %v3253_v37  ;;  %v3559_v7 = vld [vmem:[%s4977_s6 + $0x44] ss:$8 sps:$4 sm:$0xff]  }
 0xaa1   :  { %1574 = vmatprep.subr.bf16.mxu0 %v3559_v7  ;;  %v4628_v29 = vld [vmem:[#allocation2] sm:$0xff] }
 0xaa2   :  { %v4496_v52 = vadd.f32 %v3255_v30, %v4377_v9  ;;  %v1497_v54 = vmul.f32 %v4493_v49, %v4493_v49  ;;  %v3557_v9 = vld [vmem:[%s4977_s6 + $0x40] ss:$8 sps:$4 sm:$0xff]  }
 0xaa3   :  { %1575 = vmatpush1.bf16.msra.mxu0 %v3557_v9 }
 0xaa4   :  { %v1499_v55 = vsel %vm111_vm0, %v1497_v54, 0.0  ;;  %v1498_v36 = vmul.f32 %v4496_v52, %v4496_v52  ;;  %1576 = vmatprep.subr.bf16.mxu0 %v3562_v45 }
 0xaa5   :  { %1500 = vadd.xlane.f32.xlu0 %v1499_v55 }
 0xaa6   :  { %v1502_v41 = vsel %vm111_vm0, %v1498_v36, 0.0 }
 0xaa7   :  { %1503 = vadd.xlane.f32.xlu1 %v1502_v41  ;;  %1577 = vmatpush1.bf16.msra.mxu0 %v3560_v48 }
 0xaa8   :  { %1578 = vmatprep.subr.bf16.mxu0 %v3565_v56 }
 0xaab   :  { %1579 = vmatpush1.bf16.msra.mxu0 %v3563_v43 }
 0xaac   :  { %1580 = vmatprep.subr.bf16.mxu0 %v3568_v58 }
 0xaaf   :  { %1581 = vmatpush1.bf16.msra.mxu0 %v3566_v57 }
 0xab0   :  { %3359 = vmatprep.subr.bf16.mxu0 %v3880_v26 }
 0xb32   :  { %v1501_v61 = vpop.xlane.xlu0 %1500 }
 0xb33   :  { %v1505_v62 = vmul.f32 0.015625, %v1501_v61 }
 0xb34   :  { %v1504_v63 = vpop.xlane.xlu1 %1503 }
 0xb35   :  { %v1507_v46 = vadd.f32 1e-05, %v1505_v62  ;;  %v1506_v0 = vmul.f32 0.015625, %v1504_v63 }
 0xb37   :  { %3681 = vrsqrt.f32 %v1507_v46  ;;  %v1508_v3 = vadd.f32 1e-05, %v1506_v0 }
 0xb39   :  { %3683 = vrsqrt.f32 %v1508_v3 }
 0xb41   :  { %v3682_v4 = vpop.eup %3681 }
 0xb42   :  { %v1511_v5 = vmul.f32 %v3682_v4, %v4493_v49 }
 0xb43   :  { %v3684_v35 = vpop.eup %3683 }
 0xb44   :  { %v1512_v6 = vmul.f32 %v3684_v35, %v4496_v52  ;;  %v1519_v8 = vmul.f32 %v3080_v42, %v1511_v5 }
 0xb46   :  { %v1520_v38 = vmul.f32 %v3080_v42, %v1512_v6 }
 0xb48   :  { %v1521_v10 = vpack.c.bf16 %v1520_v38, %v1519_v8 }
 0xb4a   :  { %3097 = vmatmul.mubr.msk.bf16.vlgmr.msra.gmra.mrb[24].mxu0 %vm111_vm0, %v1521_v10 }
 0xb4b   :  { %3361 = vmatprep.mubr.msk.bf16.mxu0 %vm3881_vm2, %v3880_v26 }
 0xc1d   :  { %v4537_v11 = vpop.f32.mrb[24].mxu0 }
 0xc1e   :  { %1619 = vrot.lane.b32.xlu0 %v4537_v11, %s3875_s20  ;;  %v4541_v13 = vpop.f32.mrb[25].mxu0  ;;  %v1665_v44 = vsub.f32 0.0, %v4537_v11  ;;  %v1757_v6 = vmul.f32 %v4537_v11, %v4187_v22 }
 0xc1f   :  { %v4543_v39 = vpop.f32.mrb[26].mxu0 }
 0xc20   :  { %1621 = vrot.lane.b32.xlu1 %v4543_v39, %s3875_s20  ;;  %v4547_v14 = vpop.f32.mrb[27].mxu0  ;;  %v1666_v15 = vsub.f32 0.0, %v4543_v39  ;;  %v1758_v8 = vmul.f32 %v4543_v39, %v4196_v27 }
 0xc21   :  { %v4551_v1 = vpack.i.bf16 %v4547_v14, %v4541_v13  ;;  %v2165_v2 = vpack.c.bf16 %v4547_v14, %v4541_v13 }
 0xc22   :  { %1627 = vrot.lane.b32.xlu0 %v4543_v39, %s3874_s30 }
 0xc24   :  { %1625 = vrot.lane.b32.xlu1 %v4537_v11, %s3874_s30 }
 0xc26   :  { %1633 = vrot.lane.b32.xlu0 %v4543_v39, %s3876_s21 }
 0xc28   :  { %1631 = vrot.lane.b32.xlu1 %v4537_v11, %s3876_s21 }
 0xc2a   :  { %1791 = vrot.lane.b32.xlu0 %v4543_v39, %s3877_s11 }
 0xc2c   :  { %1789 = vrot.lane.b32.xlu1 %v4537_v11, %s3877_s11 }
 0xc2e   :  { %1767 = vrot.lane.b32.xlu0 %v1666_v15, %s3878_s15 }
 0xc30   :  { %1765 = vrot.lane.b32.xlu1 %v1665_v44, %s3878_s15 }
 0xc90   :  { %v4575_v50 = vpop.permute.xlu0 %1619 }
 0xc91   :  { %1793 = vrot.lane.b32.xlu1 %v4575_v50, %s3877_s11  ;;  %v1667_v33 = vsub.f32 0.0, %v4575_v50 }
 0xc92   :  { %v4579_v16 = vpop.permute.xlu1 %1621 }
 0xc93   :  { %1795 = vrot.lane.b32.xlu0 %v4579_v16, %s3877_s11  ;;  %v1668_v34 = vsub.f32 0.0, %v4579_v16 }
 0xc94   :  { %v4583_v17 = vpop.permute.xlu0 %1627 }
 0xc95   :  { %v1670_v21 = vsub.f32 0.0, %v4583_v17 }
 0xc96   :  { %v4585_v18 = vpop.permute.xlu1 %1625 }
 0xc97   :  { %1797 = vrot.lane.b32.xlu1 %v4585_v18, %s3877_s11  ;;  %1799 = vrot.lane.b32.xlu0 %v4583_v17, %s3877_s11  ;;  %v1669_v20 = vsub.f32 0.0, %v4585_v18 }
 0xc98   :  { %v4591_v31 = vpop.permute.xlu0 %1633 }
 0xc99   :  { %v1672_v25 = vsub.f32 0.0, %v4591_v31 }
 0xc9a   :  { %v4595_v19 = vpop.permute.xlu1 %1631 }
 0xc9b   :  { %1769 = vrot.lane.b32.xlu1 %v1667_v33, %s3878_s15  ;;  %1771 = vrot.lane.b32.xlu0 %v1668_v34, %s3878_s15  ;;  %v1671_v24 = vsub.f32 0.0, %v4595_v19 }
 0xc9c   :  { %v1792_v51 = vpop.permute.xlu0 %1791 }
 0xc9e   :  { %v1790_v23 = vpop.permute.xlu1 %1789 }
 0xc9f   :  { %1773 = vrot.lane.b32.xlu1 %v1669_v20, %s3878_s15  ;;  %1775 = vrot.lane.b32.xlu0 %v1670_v21, %s3878_s15 }
 0xca0   :  { %v1768_v40 = vpop.permute.xlu0 %1767 }
 0xca1   :  { %v1814_v47 = vsel %vm342_vm1, %v1768_v40, %v1792_v51 }
 0xca2   :  { %v1766_v53 = vpop.permute.xlu1 %1765  ;;  %v1822_v28 = vmul.f32 %v4625_v60, %v1814_v47  ;;  %v1761_v47 = vmul.f32 %v4585_v18, %v4187_v22 }
 0xca3   :  { %1777 = vrot.lane.b32.xlu1 %v1671_v24, %s3878_s15  ;;  %1779 = vrot.lane.b32.xlu0 %v1672_v25, %s3878_s15  ;;  %v1813_v59 = vsel %vm342_vm1, %v1766_v53, %v1790_v23 }
 0xca4   :  { %v1821_v37 = vmul.f32 %v4628_v29, %v1813_v59  ;;  %v1762_v59 = vmul.f32 %v4583_v17, %v4196_v27 }
 0xca7   :  { %1801 = vrot.lane.b32.xlu1 %v4595_v19, %s3877_s11  ;;  %1803 = vrot.lane.b32.xlu0 %v4591_v31, %s3877_s11 }
 0xcab   :  { %1837 = vrot.lane.b32.xlu1 %v1821_v37, %s3870_s2  ;;  %1839 = vrot.lane.b32.xlu0 %v1822_v28, %s3870_s2 }
 0xd03   :  { %v1794_v32 = vpop.permute.xlu1 %1793 }
 0xd05   :  { %v1796_v30 = vpop.permute.xlu0 %1795 }
 0xd09   :  { %v1798_v54 = vpop.permute.xlu1 %1797  ;;  %v1800_v55 = vpop.permute.xlu0 %1799 }
 0xd0d   :  { %v1770_v36 = vpop.permute.xlu1 %1769  ;;  %v1772_v41 = vpop.permute.xlu0 %1771 }
 0xd0e   :  { %v1815_v7 = vsel %vm342_vm1, %v1770_v36, %v1794_v32  ;;  %v1816_v9 = vsel %vm342_vm1, %v1772_v41, %v1796_v30 }
 0xd0f   :  { %v1823_v45 = vmul.f32 %v4628_v29, %v1815_v7  ;;  %v1824_v48 = vmul.f32 %v4625_v60, %v1816_v9 }
 0xd11   :  { %1841 = vrot.lane.b32.xlu1 %v1823_v45, %s3870_s2  ;;  %v1774_v56 = vpop.permute.xlu1 %1773  ;;  %1843 = vrot.lane.b32.xlu0 %v1824_v48, %s3870_s2  ;;  %v1776_v43 = vpop.permute.xlu0 %1775 }
 0xd12   :  { %v1817_v57 = vsel %vm342_vm1, %v1774_v56, %v1798_v54  ;;  %v1818_v58 = vsel %vm342_vm1, %v1776_v43, %v1800_v55  ;;  %v1763_v54 = vmul.f32 %v4595_v19, %v4187_v22  ;;  %v1764_v55 = vmul.f32 %v4591_v31, %v4196_v27 }
 0xd13   :  { %v1825_v61 = vmul.f32 %v4628_v29, %v1817_v57  ;;  %v1826_v62 = vmul.f32 %v4625_v60, %v1818_v58 }
 0xd15   :  { %1845 = vrot.lane.b32.xlu1 %v1825_v61, %s3870_s2  ;;  %v1778_v63 = vpop.permute.xlu1 %1777  ;;  %1847 = vrot.lane.b32.xlu0 %v1826_v62, %s3870_s2  ;;  %v1780_v46 = vpop.permute.xlu0 %1779  ;;  %v4724_v62 = vld [vmem:[%s4972_s1] sm:$0xff] }
 0xd19   :  { %v1802_v0 = vpop.permute.xlu1 %1801  ;;  %v1804_v3 = vpop.permute.xlu0 %1803 }
 0xd1a   :  { %v1819_v4 = vsel %vm342_vm1, %v1778_v63, %v1802_v0  ;;  %v1820_v5 = vsel %vm342_vm1, %v1780_v46, %v1804_v3  ;;  %v1657_v63 = vmul.f32 %v4724_v62, %v4537_v11 }
 0xd1b   :  { %v1827_v35 = vmul.f32 %v4628_v29, %v1819_v4  ;;  %v1828_v42 = vmul.f32 %v4625_v60, %v1820_v5 }
 0xd1d   :  { %1849 = vrot.lane.b32.xlu1 %v1827_v35, %s3870_s2  ;;  %v1838_v38 = vpop.permute.xlu1 %1837  ;;  %1851 = vrot.lane.b32.xlu0 %v1828_v42, %s3870_s2  ;;  %v1840_v10 = vpop.permute.xlu0 %1839 }
 0xd1e   :  { %v1861_v51 = vadd.f32 %v1838_v38, %v1757_v6  ;;  %v1862_v23 = vadd.f32 %v1840_v10, %v1758_v8 }
 0xd20   :  { %v1869_v40 = vpack.c.bf16 %v1862_v23, %v1861_v51 }
 0xd21   :  { %1683 = vrot.lane.b32.xlu1 %v1666_v15, %s3879_s26  ;;  %1681 = vrot.lane.b32.xlu0 %v1665_v44, %s3879_s26  ;;  %v1759_v15 = vmul.f32 %v4575_v50, %v4187_v22  ;;  %v1760_v44 = vmul.f32 %v4579_v16, %v4196_v27  ;;  %v4716_v27 = vld [vmem:[%s4972_s1 + $0x8] sm:$0xff] }
 0xd22   :  { %v1658_v58 = vmul.f32 %v4716_v27, %v4543_v39 }
 0xd25   :  { %1707 = vrot.lane.b32.xlu1 %v4543_v39, %s3868_s16  ;;  %1705 = vrot.lane.b32.xlu0 %v4537_v11, %s3868_s16 }
 0xd29   :  { %1685 = vrot.lane.b32.xlu1 %v1667_v33, %s3879_s26  ;;  %1687 = vrot.lane.b32.xlu0 %v1668_v34, %s3879_s26 }
 0xd2d   :  { %1709 = vrot.lane.b32.xlu1 %v4575_v50, %s3868_s16  ;;  %1711 = vrot.lane.b32.xlu0 %v4579_v16, %s3868_s16 }
 0xd31   :  { %1691 = vrot.lane.b32.xlu1 %v1670_v21, %s3879_s26  ;;  %1689 = vrot.lane.b32.xlu0 %v1669_v20, %s3879_s26 }
 0xd35   :  { %1715 = vrot.lane.b32.xlu1 %v4583_v17, %s3868_s16  ;;  %1713 = vrot.lane.b32.xlu0 %v4585_v18, %s3868_s16 }
 0xd39   :  { %1874 = vrot.lane.b32.xlu1 %v1869_v40, %s3870_s2 }
 0xd3d   :  { %1693 = vrot.lane.b32.xlu1 %v1671_v24, %s3879_s26 }
 0xd83   :  { %v1842_v33 = vpop.permute.xlu1 %1841  ;;  %v1844_v34 = vpop.permute.xlu0 %1843 }
 0xd84   :  { %v1863_v20 = vadd.f32 %v1842_v33, %v1759_v15  ;;  %v1864_v21 = vadd.f32 %v1844_v34, %v1760_v44 }
 0xd86   :  { %v1870_v53 = vpack.c.bf16 %v1864_v21, %v1863_v20 }
 0xd87   :  { %v1846_v28 = vpop.permute.xlu1 %1845  ;;  %v1848_v37 = vpop.permute.xlu0 %1847 }
 0xd88   :  { %v1865_v24 = vadd.f32 %v1846_v28, %v1761_v47  ;;  %v1866_v32 = vadd.f32 %v1848_v37, %v1762_v59  ;;  %1924 = vrot.lane.b32.xlu0 %v1870_v53, %s3870_s2  ;;  %v1659_v53 = vmul.f32 %v4724_v62, %v4575_v50  ;;  %v1660_v47 = vmul.f32 %v4716_v27, %v4579_v16 }
 0xd89   :  { %v1661_v50 = vmul.f32 %v4724_v62, %v4585_v18 }
 0xd8a   :  { %v1871_v30 = vpack.c.bf16 %v1866_v32, %v1865_v24 }
 0xd8c   :  { %1695 = vrot.lane.b32.xlu0 %v1672_v25, %s3879_s26  ;;  %1974 = vrot.lane.b32.xlu1 %v1871_v30, %s3870_s2 }
 0xd8f   :  { %v1850_v36 = vpop.permute.xlu1 %1849  ;;  %v1852_v41 = vpop.permute.xlu0 %1851 }
 0xd90   :  { %v1867_v7 = vadd.f32 %v1850_v36, %v1763_v54  ;;  %v1868_v9 = vadd.f32 %v1852_v41, %v1764_v55  ;;  %1717 = vrot.lane.b32.xlu1 %v4595_v19, %s3868_s16  ;;  %v1662_v54 = vmul.f32 %v4716_v27, %v4583_v17 }
 0xd92   :  { %v1872_v45 = vpack.c.bf16 %v1868_v9, %v1867_v7 }
 0xd93   :  { %v1684_v48 = vpop.permute.xlu1 %1683  ;;  %v1682_v56 = vpop.permute.xlu0 %1681 }
 0xd94   :  { %2024 = vrot.lane.b32.xlu0 %v1872_v45, %s3870_s2 }
 0xd97   :  { %v1708_v25 = vpop.permute.xlu1 %1707  ;;  %v1706_v43 = vpop.permute.xlu0 %1705 }
 0xd98   :  { %v1730_v57 = vsel %vm342_vm1, %v1684_v48, %v1708_v25  ;;  %v1729_v22 = vsel %vm342_vm1, %v1682_v56, %v1706_v43  ;;  %1719 = vrot.lane.b32.xlu0 %v4591_v31, %s3868_s16 }
 0xd99   :  { %v1738_v61 = vmul.f32 %v4625_v60, %v1730_v57  ;;  %v1737_v46 = vmul.f32 %v4628_v29, %v1729_v22  ;;  %v1663_v57 = vmul.f32 %v4724_v62, %v4595_v19  ;;  %v1664_v22 = vmul.f32 %v4716_v27, %v4591_v31 }
 0xd9b   :  { %v1746_v0 = vadd.f32 %v1738_v61, %v1658_v58  ;;  %v1745_v3 = vadd.f32 %v1737_v46, %v1657_v63  ;;  %v1686_v4 = vpop.permute.xlu1 %1685  ;;  %v1688_v11 = vpop.permute.xlu0 %1687  ;;  %v3745_v61 = vld [vmem:[#allocation5] sm:$0xff] }
 0xd9d   :  { %v1753_v5 = vpack.c.bf16 %v1746_v0, %v1745_v3  ;;  %v3746_v3 = vld [vmem:[#allocation5 + $0x8] sm:$0xff] }
 0xd9f   :  { %v1710_v35 = vpop.permute.xlu1 %1709  ;;  %v1712_v51 = vpop.permute.xlu0 %1711 }
 0xda0   :  { %v1731_v42 = vsel %vm342_vm1, %v1686_v4, %v1710_v35  ;;  %v1732_v40 = vsel %vm342_vm1, %v1688_v11, %v1712_v51 }
 0xda1   :  { %v1739_v44 = vmul.f32 %v4628_v29, %v1731_v42  ;;  %v1740_v33 = vmul.f32 %v4625_v60, %v1732_v40 }
 0xda3   :  { %v1692_v39 = vpop.permute.xlu1 %1691  ;;  %v1690_v23 = vpop.permute.xlu0 %1689  ;;  %v1747_v28 = vadd.f32 %v1739_v44, %v1659_v53  ;;  %v1748_v37 = vadd.f32 %v1740_v33, %v1660_v47 }
 0xda5   :  { %v1754_v55 = vpack.c.bf16 %v1748_v37, %v1747_v28 }
 0xda7   :  { %v1716_v6 = vpop.permute.xlu1 %1715  ;;  %v1714_v15 = vpop.permute.xlu0 %1713 }
 0xda8   :  { %v1734_v8 = vsel %vm342_vm1, %v1692_v39, %v1716_v6  ;;  %v1733_v34 = vsel %vm342_vm1, %v1690_v23, %v1714_v15 }
 0xda9   :  { %v1742_v24 = vmul.f32 %v4625_v60, %v1734_v8  ;;  %v1741_v32 = vmul.f32 %v4628_v29, %v1733_v34 }
 0xdab   :  { %v1875_v38 = vpop.permute.xlu1 %1874  ;;  %v1750_v36 = vadd.f32 %v1742_v24, %v1662_v54  ;;  %v1749_v41 = vadd.f32 %v1741_v32, %v1661_v50 }
 0xdac   :  { %v1880_v10 = vsel %vm498_vm3, %v1875_v38, 0 }
 0xdad   :  { %3360 = vmatpush3.bf16.xpose.msra.mxu0 %v1880_v10  ;;  %v1755_v45 = vpack.c.bf16 %v1750_v36, %v1749_v41 }
 0xdae   :  { %3371 = vmatprep.subr.bf16.mxu0 %v3880_v26 }
 0xdaf   :  { %v1694_v20 = vpop.permute.xlu1 %1693 }
 0xdb4   :  { %3362 = vmatmul.mubr.msk.bf16.vlgmr.msra.gmra.mrb[28].mxu0 %vm498_vm3, %v1753_v5 }
 0xdb5   :  { %3373 = vmatprep.mubr.msk.bf16.mxu0 %vm3881_vm2, %v3880_v26 }
 0xdfa   :  { %v1925_v21 = vpop.permute.xlu0 %1924 }
 0xdfb   :  { %v1930_v59 = vsel %vm498_vm3, %v1925_v21, 0 }
 0xdfc   :  { %3366 = vmatpush3.bf16.xpose.msra.mxu1 %v1930_v59 }
 0xdfd   :  { %3377 = vmatprep.subr.bf16.mxu1 %v3880_v26 }
 0xdfe   :  { %v1975_v30 = vpop.permute.xlu1 %1974  ;;  %v1696_v7 = vpop.permute.xlu0 %1695 }
 0xdff   :  { %v1980_v16 = vsel %vm498_vm3, %v1975_v30, 0 }
 0xe00   :  { %3372 = vmatpush3.bf16.xpose.msra.mxu0 %v1980_v16 }
 0xe01   :  { %3383 = vmatprep.subr.bf16.mxu0 %v3880_v26 }
 0xe02   :  { %v1718_v9 = vpop.permute.xlu1 %1717 }
 0xe03   :  { %3368 = vmatmul.mubr.msk.bf16.vlgmr.msra.gmra.mrb[28].mxu1 %vm498_vm3, %v1754_v55  ;;  %v1735_v48 = vsel %vm342_vm1, %v1694_v20, %v1718_v9 }
 0xe04   :  { %3379 = vmatprep.mubr.msk.bf16.mxu1 %vm3881_vm2, %v3880_v26  ;;  %v1743_v56 = vmul.f32 %v4628_v29, %v1735_v48 }
 0xe06   :  { %v2025_v17 = vpop.permute.xlu0 %2024  ;;  %v1751_v14 = vadd.f32 %v1743_v56, %v1663_v57 }
 0xe07   :  { %v2030_v18 = vsel %vm498_vm3, %v2025_v17, 0  ;;  %3374 = vmatmul.mubr.msk.bf16.vlgmr.msra.gmra.mrb[32].mxu0 %vm498_vm3, %v1755_v45 }
 0xe08   :  { %3378 = vmatpush3.bf16.xpose.msra.mxu1 %v2030_v18  ;;  %3384 = vmatpush3.bf16.msra.mxu0 %v2165_v2 }
 0xe09   :  { %3385 = vmatprep.mubr.msk.bf16.mxu0 %vm3881_vm2, %v3880_v26  ;;  %3395 = vmatprep.subr.bf16.mxu0 %v3880_v26 }
 0xe0a   :  { %v1720_v25 = vpop.permute.xlu0 %1719  ;;  %3389 = vmatprep.subr.bf16.mxu1 %v3880_v26 }
 0xe0b   :  { %v1736_v43 = vsel %vm342_vm1, %v1696_v7, %v1720_v25 }
 0xe0c   :  { %v1744_v13 = vmul.f32 %v4625_v60, %v1736_v43 }
 0xe0e   :  { %v1752_v2 = vadd.f32 %v1744_v13, %v1664_v22 }
 0xe10   :  { %v1756_v58 = vpack.c.bf16 %v1752_v2, %v1751_v14 }
 0xe12   :  { %3380 = vmatmul.mubr.msk.bf16.vlgmr.msra.gmra.mrb[32].mxu1 %vm498_vm3, %v1756_v58 }
 0xe13   :  { %3391 = vmatprep.mubr.msk.bf16.mxu1 %vm3881_vm2, %v3880_v26 }
 0xe87   :  { %v1916_v29 = vpop.f32.mrb[28].mxu0 }
 0xe88   :  { %v1917_v63 = vadd.f32 %v3745_v61, %v1916_v29  ;;  %v3363_v46 = vpop.f32.mrb[29].mxu0 }
 0xe89   :  { %v1919_v0 = vpop.f32.mrb[30].mxu0 }
 0xe8a   :  { %v1920_v19 = vadd.f32 %v3746_v3, %v1919_v0  ;;  %v3364_v62 = vpop.f32.mrb[31].mxu0  ;;  %v2073_v31 = vsel %vm498_vm3, %v1917_v63, -inf }
 0xe8b   :  { %2074 = vmax.xlane.f32.xlu1 %v2073_v31 }
 0xe8c   :  { %v2076_v60 = vsel %vm498_vm3, %v1920_v19, -inf }
 0xe8d   :  { %2077 = vmax.xlane.f32.xlu0 %v2076_v60 }
 0xed6   :  { %v1966_v27 = vpop.f32.mrb[28].mxu1 }
 0xed7   :  { %v1967_v4 = vadd.f32 %v3745_v61, %v1966_v27  ;;  %v3369_v5 = vpop.f32.mrb[29].mxu1 }
 0xed8   :  { %v1969_v35 = vpop.f32.mrb[30].mxu1 }
 0xed9   :  { %v1970_v42 = vadd.f32 %v3746_v3, %v1969_v35  ;;  %v3370_v39 = vpop.f32.mrb[31].mxu1  ;;  %v2079_v6 = vsel %vm498_vm3, %v1967_v4, -inf }
 0xeda   :  { %2080 = vmax.xlane.f32.xlu0 %v2079_v6  ;;  %v2016_v8 = vpop.f32.mrb[32].mxu0 }
 0xedb   :  { %v2017_v38 = vadd.f32 %v3745_v61, %v2016_v8  ;;  %v3375_v10 = vpop.f32.mrb[33].mxu0  ;;  %v2082_v11 = vsel %vm498_vm3, %v1970_v42, -inf }
 0xedc   :  { %2083 = vmax.xlane.f32.xlu1 %v2082_v11  ;;  %v2019_v51 = vpop.f32.mrb[34].mxu0 }
 0xedd   :  { %v2020_v23 = vadd.f32 %v3746_v3, %v2019_v51  ;;  %v3376_v40 = vpop.f32.mrb[35].mxu0  ;;  %v2085_v15 = vsel %vm498_vm3, %v2017_v38, -inf }
 0xede   :  { %2086 = vmax.xlane.f32.xlu0 %v2085_v15 }
 0xedf   :  { %v2088_v44 = vsel %vm498_vm3, %v2020_v23, -inf }
 0xee0   :  { %2089 = vmax.xlane.f32.xlu1 %v2088_v44 }
 0xee5   :  { %v2066_v33 = vpop.f32.mrb[32].mxu1 }
 0xee6   :  { %v2067_v34 = vadd.f32 %v3745_v61, %v2066_v33  ;;  %v3381_v20 = vpop.f32.mrb[33].mxu1 }
 0xee7   :  { %v2069_v21 = vpop.f32.mrb[34].mxu1 }
 0xee8   :  { %v2070_v53 = vadd.f32 %v3746_v3, %v2069_v21  ;;  %v3382_v47 = vpop.f32.mrb[35].mxu1  ;;  %v2091_v59 = vsel %vm498_vm3, %v2067_v34, -inf }
 0xee9   :  { %2092 = vmax.xlane.f32.xlu0 %v2091_v59 }
 0xeea   :  { %v2094_v28 = vsel %vm498_vm3, %v2070_v53, -inf }
 0xeeb   :  { %2095 = vmax.xlane.f32.xlu1 %v2094_v28 }
 0xf18   :  { %v2075_v37 = vpop.xlane.xlu1 %2074 }
 0xf19   :  { %v2097_v24 = vsub.f32 %v1917_v63, %v2075_v37 }
 0xf1a   :  { %v2078_v32 = vpop.xlane.xlu0 %2077 }
 0xf1b   :  { %v2105_v30 = vmul.f32 1.442695, %v2097_v24  ;;  %v2098_v54 = vsub.f32 %v1920_v19, %v2078_v32 }
 0xf1d   :  { %3685 = vpow2.f32 %v2105_v30  ;;  %v2107_v50 = vmul.f32 1.442695, %v2098_v54 }
 0xf1f   :  { %3687 = vpow2.f32 %v2107_v50 }
 0xf27   :  { %v3686_v16 = vpop.eup %3685 }
 0xf28   :  { %v2121_v55 = vsel %vm498_vm3, %v3686_v16, 0.0 }
 0xf29   :  { %v3688_v36 = vpop.eup %3687  ;;  %2122 = vadd.xlane.f32.xlu0 %v2121_v55 }
 0xf2a   :  { %v2124_v41 = vsel %vm498_vm3, %v3688_v36, 0.0 }
 0xf2b   :  { %2125 = vadd.xlane.f32.xlu1 %v2124_v41 }
 0xf67   :  { %v2081_v7 = vpop.xlane.xlu0 %2080 }
 0xf68   :  { %v2099_v9 = vsub.f32 %v1967_v4, %v2081_v7 }
 0xf69   :  { %v2084_v45 = vpop.xlane.xlu1 %2083 }
 0xf6a   :  { %v2109_v17 = vmul.f32 1.442695, %v2099_v9  ;;  %v2100_v48 = vsub.f32 %v1970_v42, %v2084_v45 }
 0xf6b   :  { %v2087_v18 = vpop.xlane.xlu0 %2086 }
 0xf6c   :  { %3689 = vpow2.f32 %v2109_v17  ;;  %v2111_v56 = vmul.f32 1.442695, %v2100_v48  ;;  %v2101_v25 = vsub.f32 %v2017_v38, %v2087_v18 }
 0xf6d   :  { %v2090_v43 = vpop.xlane.xlu1 %2089 }
 0xf6e   :  { %3691 = vpow2.f32 %v2111_v56  ;;  %v2113_v57 = vmul.f32 1.442695, %v2101_v25  ;;  %v2102_v22 = vsub.f32 %v2020_v23, %v2090_v43 }
 0xf70   :  { %3693 = vpow2.f32 %v2113_v57  ;;  %v2115_v13 = vmul.f32 1.442695, %v2102_v22 }
 0xf72   :  { %3695 = vpow2.f32 %v2115_v13 }
 0xf76   :  { %v4787_v14 = vpop.eup %3689  ;;  %v2093_v2 = vpop.xlane.xlu0 %2092 }
 0xf77   :  { %v2103_v58 = vsub.f32 %v2067_v34, %v2093_v2  ;;  %v2127_v29 = vsel %vm498_vm3, %v4787_v14, 0.0 }
 0xf78   :  { %v3692_v61 = vpop.eup %3691  ;;  %2128 = vadd.xlane.f32.xlu0 %v2127_v29  ;;  %v2096_v27 = vpop.xlane.xlu1 %2095 }
 0xf79   :  { %v2117_v63 = vmul.f32 1.442695, %v2103_v58  ;;  %v2130_v46 = vsel %vm498_vm3, %v3692_v61, 0.0  ;;  %v2104_v4 = vsub.f32 %v2070_v53, %v2096_v27  ;;  %v3569_v58 = vld [vmem:[#allocation7 + $0x20] sm:$0xff]  }
 0xf7a   :  { %v3694_v0 = vpop.eup %3693  ;;  %2131 = vadd.xlane.f32.xlu1 %v2130_v46 }
 0xf7b   :  { %3697 = vpow2.f32 %v2117_v63  ;;  %v2133_v3 = vsel %vm498_vm3, %v3694_v0, 0.0  ;;  %v2119_v5 = vmul.f32 1.442695, %v2104_v4  ;;  %v3570_v63 = vld [vmem:[#allocation7 + $0x28] sm:$0xff]  }
 0xf7c   :  { %v3696_v19 = vpop.eup %3695  ;;  %2134 = vadd.xlane.f32.xlu0 %v2133_v3 }
 0xf7d   :  { %v2136_v62 = vsel %vm498_vm3, %v3696_v19, 0.0  ;;  %3699 = vpow2.f32 %v2119_v5  ;;  %v3572_v5 = vld [vmem:[#allocation7 + $0x38] sm:$0xff]  }
 0xf7e   :  { %2137 = vadd.xlane.f32.xlu1 %v2136_v62  ;;  %v3571_v62 = vld [vmem:[#allocation7 + $0x30] sm:$0xff]  }
 0xf85   :  { %v4794_v31 = vpop.eup %3697 }
 0xf86   :  { %v2139_v60 = vsel %vm498_vm3, %v4794_v31, 0.0 }
 0xf87   :  { %2140 = vadd.xlane.f32.xlu0 %v2139_v60  ;;  %v3700_v35 = vpop.eup %3699 }
 0xf88   :  { %v2142_v42 = vsel %vm498_vm3, %v3700_v35, 0.0 }
 0xf8f   :  { %3477 = vrot.lane.b32.xlu1 %v4551_v1, %s3874_s30 }
 0xf9d   :  { %3472 = vrot.lane.b32.xlu0 %v4551_v1, %s3875_s20 }
 0xfb3   :  { %2143 = vadd.xlane.f32.xlu1 %v2142_v42 }
 0xfb6   :  { %v2123_v39 = vpop.xlane.xlu0 %2122 }
 0xfb7   :  { %3701 = vrcp.f32 %v2123_v39 }
 0xfb8   :  { %v2126_v6 = vpop.xlane.xlu1 %2125 }
 0xfb9   :  { %3703 = vrcp.f32 %v2126_v6 }
 0xfc1   :  { %v3702_v8 = vpop.eup %3701 }
 0xfc2   :  { %v2153_v10 = vmul.f32 %v3702_v8, %v3686_v16 }
 0xfc3   :  { %v3704_v38 = vpop.eup %3703 }
 0xfc4   :  { %v2154_v11 = vmul.f32 %v3704_v38, %v3688_v36  ;;  %3482 = vrot.lane.b32.xlu1 %v4551_v1, %s3876_s21 }
 0xfc6   :  { %v2161_v51 = vpack.c.bf16 %v2154_v11, %v2153_v10 }
 0xfc8   :  { %3386 = vmatmul.mubr.msk.bf16.vlgmr.msra.gmra.mrb[36].mxu0 %vm498_vm3, %v2161_v51 }
 0xfc9   :  { %3397 = vmatprep.mubr.msk.bf16.mxu0 %vm3881_vm2, %v3880_v26 }
0x1005   :  { %v2129_v23 = vpop.xlane.xlu0 %2128 }
0x1007   :  { %v2132_v40 = vpop.xlane.xlu1 %2131 }
0x1009   :  { %v2135_v15 = vpop.xlane.xlu0 %2134 }
0x100a   :  { %3705 = vrcp.f32 %v2135_v15 }
0x100b   :  { %v2138_v44 = vpop.xlane.xlu1 %2137 }
0x100c   :  { %3707 = vrcp.f32 %v2138_v44 }
0x100d   :  { %3709 = vrcp.f32 %v2132_v40 }
0x100e   :  { %3711 = vrcp.f32 %v2129_v23 }
0x100f   :  { %v3478_v33 = vpop.permute.xlu1 %3477 }
0x1010   :  { %v3480_v34 = vunpack.i.h.bf16 %v3478_v33  ;;  %v3479_v20 = vunpack.i.l.bf16 %v3478_v33 }
0x1012   :  { %v2167_v21 = vpack.c.bf16 %v3480_v34, %v3479_v20 }
0x1014   :  { %v3706_v53 = vpop.eup %3705  ;;  %v2141_v1 = vpop.xlane.xlu0 %2140  ;;  %3396 = vmatpush3.bf16.msra.mxu0 %v2167_v21 }
0x1015   :  { %3407 = vmatprep.subr.bf16.mxu0 %v3880_v26  ;;  %v2157_v28 = vmul.f32 %v3706_v53, %v3694_v0  ;;  %3713 = vrcp.f32 %v2141_v1 }
0x1016   :  { %v3708_v47 = vpop.eup %3707 }
0x1017   :  { %v3710_v59 = vpop.eup %3709  ;;  %v2158_v37 = vmul.f32 %v3708_v47, %v3696_v19 }
0x1018   :  { %v3473_v24 = vpop.permute.xlu0 %3472  ;;  %v3712_v32 = vpop.eup %3711  ;;  %v2156_v16 = vmul.f32 %v3710_v59, %v3692_v61 }
0x1019   :  { %v3475_v30 = vunpack.i.h.bf16 %v3473_v24  ;;  %v3474_v54 = vunpack.i.l.bf16 %v3473_v24  ;;  %v2163_v50 = vpack.c.bf16 %v2158_v37, %v2157_v28  ;;  %v2155_v36 = vmul.f32 %v3712_v32, %v4787_v14 }
0x101b   :  { %v2166_v55 = vpack.c.bf16 %v3475_v30, %v3474_v54  ;;  %3398 = vmatmul.mubr.msk.bf16.vlgmr.msra.gmra.mrb[40].mxu0 %vm498_vm3, %v2163_v50  ;;  %v2162_v41 = vpack.c.bf16 %v2156_v16, %v2155_v36  ;;  %v3573_v36 = vld [vmem:[%s4979_s8 + $0x80] ss:$16 sps:$4 sm:$0xff]  }
0x101c   :  { %3415 = vmatprep.mubr.msk.bf16.mxu0 %vm3881_vm2, %v3880_v26  ;;  %3408 = vmatpush3.bf16.msra.mxu0 %v3569_v58 }
0x101d   :  { %3390 = vmatpush3.bf16.msra.mxu1 %v2166_v55  ;;  %3409 = vmatprep.subr.bf16.mxu0 %v3880_v26 }
0x101e   :  { %3401 = vmatprep.subr.bf16.mxu1 %v3880_v26 }
0x101f   :  { %v3714_v18 = vpop.eup %3713 }
0x1020   :  { %3392 = vmatmul.mubr.msk.bf16.vlgmr.msra.gmra.mrb[36].mxu1 %vm498_vm3, %v2162_v41  ;;  %v2159_v25 = vmul.f32 %v3714_v18, %v4794_v31  ;;  %3410 = vmatpush3.bf16.msra.mxu0 %v3570_v63  ;;  %v3576_v41 = vld [vmem:[%s4979_s8 + $0x88] ss:$16 sps:$4 sm:$0xff]   ;;  %v3590_v18 = vld [vmem:[%s4979_s8 + $0xcc] ss:$16 sps:$4 sm:$0xff]  }
0x1021   :  { %3403 = vmatprep.mubr.msk.bf16.mxu1 %vm3881_vm2, %v3880_v26  ;;  %3411 = vmatprep.subr.bf16.mxu0 %v3880_v26 }
0x1024   :  { %3412 = vmatpush3.bf16.msra.mxu0 %v3571_v62 }
0x1025   :  { %3413 = vmatprep.subr.bf16.mxu0 %v3880_v26 }
0x1028   :  { %3414 = vmatpush3.bf16.msra.mxu0 %v3572_v5  ;;  %v3598_v5 = vld [vmem:[%s4980_s9 + $0x80] sm:$0xff]  }
0x1040   :  { %v2144_v7 = vpop.xlane.xlu1 %2143 }
0x1041   :  { %3715 = vrcp.f32 %v2144_v7  ;;  %v3581_v7 = vld [vmem:[%s4979_s8 + $0xa4] ss:$16 sps:$4 sm:$0xff]  }
0x1044   :  { %v3483_v9 = vpop.permute.xlu1 %3482 }
0x1045   :  { %v3485_v45 = vunpack.i.h.bf16 %v3483_v9  ;;  %v3484_v17 = vunpack.i.l.bf16 %v3483_v9  ;;  %v3584_v9 = vld [vmem:[%s4979_s8 + $0xac] ss:$16 sps:$4 sm:$0xff]  }
0x1047   :  { %v2168_v48 = vpack.c.bf16 %v3485_v45, %v3484_v17  ;;  %v3579_v45 = vld [vmem:[%s4979_s8 + $0xa0] ss:$16 sps:$4 sm:$0xff]   ;;  %v3582_v17 = vld [vmem:[%s4979_s8 + $0xa8] ss:$16 sps:$4 sm:$0xff]  }
0x1049   :  { %3402 = vmatpush3.bf16.msra.mxu1 %v2168_v48  ;;  %v3587_v48 = vld [vmem:[%s4979_s8 + $0xc4] ss:$16 sps:$4 sm:$0xff]  }
0x104b   :  { %v3716_v56 = vpop.eup %3715 }
0x104c   :  { %v2160_v43 = vmul.f32 %v3716_v56, %v3700_v35  ;;  %v3585_v56 = vld [vmem:[%s4979_s8 + $0xc0] ss:$16 sps:$4 sm:$0xff]  }
0x104e   :  { %v2164_v57 = vpack.c.bf16 %v2160_v43, %v2159_v25  ;;  %v3588_v25 = vld [vmem:[%s4979_s8 + $0xc8] ss:$16 sps:$4 sm:$0xff]   ;;  %v3591_v43 = vld [vmem:[%s4979_s8 + $0xe0] ss:$16 sps:$4 sm:$0xff]  }
0x1050   :  { %3404 = vmatmul.mubr.msk.bf16.vlgmr.msra.gmra.mrb[40].mxu1 %vm498_vm3, %v2164_v57  ;;  %v3593_v57 = vld [vmem:[%s4979_s8 + $0xe4] ss:$16 sps:$4 sm:$0xff]  }
0x1051   :  { %2614 = vmatprep.mubr.bf16.mxu1 %v3873_v12 }
0x109b   :  { %v2206_v22 = vpop.f32.mrb[36].mxu0 }
0x109c   :  { %v3387_v13 = vpop.f32.mrb[37].mxu0 }
0x109d   :  { %v2209_v14 = vpop.f32.mrb[38].mxu0  ;;  %v3596_v13 = vld [vmem:[%s4979_s8 + $0xec] ss:$16 sps:$4 sm:$0xff]  }
0x109e   :  { %v3388_v2 = vpop.f32.mrb[39].mxu0 }
0x10ee   :  { %v2294_v29 = vpop.f32.mrb[40].mxu0 }
0x10ef   :  { %v3399_v61 = vpop.f32.mrb[41].mxu0 }
0x10f0   :  { %v2297_v46 = vpop.f32.mrb[42].mxu0 }
0x10f1   :  { %v3491_v0 = vpack.i.bf16 %v2297_v46, %v2294_v29  ;;  %v3400_v3 = vpop.f32.mrb[43].mxu0 }
0x10f3   :  { %v2250_v19 = vpop.f32.mrb[36].mxu1  ;;  %3492 = vrot.lane.b32.xlu1 %v3491_v0, %s3882_s27 }
0x10f4   :  { %v3393_v31 = vpop.f32.mrb[37].mxu1 }
0x10f5   :  { %v2253_v60 = vpop.f32.mrb[38].mxu1 }
0x10f6   :  { %v3486_v27 = vpack.i.bf16 %v2253_v60, %v2250_v19  ;;  %v3394_v4 = vpop.f32.mrb[39].mxu1  ;;  %v3112_v19 = vld [vmem:[%s4976_s5 + $0x1] ss:$0 sm:$0xff] }
0x10f7   :  { %v3597_v4 = vld [vmem:[%s4980_s9 + $0xc0] sm:$0xff]  }
0x10f8   :  { %3487 = vrot.lane.b32.xlu0 %v3486_v27, %s3883_s28 }
0x1123   :  { %v2338_v35 = vpop.f32.mrb[40].mxu1 }
0x1124   :  { %v3405_v42 = vpop.f32.mrb[41].mxu1 }
0x1125   :  { %v2341_v39 = vpop.f32.mrb[42].mxu1  ;;  %v3600_v42 = vld [vmem:[%s4980_s9 + $0x88] sm:$0xff]  }
0x1126   :  { %v3496_v6 = vpack.i.bf16 %v2341_v39, %v2338_v35  ;;  %v3406_v8 = vpop.f32.mrb[43].mxu1  ;;  %v3599_v35 = vld [vmem:[%s4980_s9 + $0xc8] sm:$0xff]   ;;  %v3602_v39 = vld [vmem:[%s4980_s9 + $0x90] sm:$0xff]  }
0x1127   :  { %v3604_v8 = vld [vmem:[%s4980_s9 + $0x98] sm:$0xff]  }
0x1128   :  { %3497 = vrot.lane.b32.xlu0 %v3496_v6, %s3884_s3  ;;  %v3603_v6 = vld [vmem:[%s4980_s9 + $0xd8] sm:$0xff]  }
0x1165   :  { %v3493_v51 = vpop.permute.xlu1 %3492 }
0x1166   :  { %v3495_v15 = vunpack.i.h.bf16 %v3493_v51  ;;  %v3494_v44 = vunpack.i.l.bf16 %v3493_v51  ;;  %v3608_v51 = vld [vmem:[%s4980_s9 + $0xa8] sm:$0xff]  }
0x116a   :  { %v3488_v38 = vpop.permute.xlu0 %3487 }
0x116b   :  { %v3490_v10 = vunpack.i.h.bf16 %v3488_v38  ;;  %v3489_v11 = vunpack.i.l.bf16 %v3488_v38  ;;  %v3605_v38 = vld [vmem:[%s4980_s9 + $0xe0] sm:$0xff]  }
0x116d   :  { %v2369_v23 = vsel %vm498_vm3, %v2206_v22, %v3489_v11  ;;  %v2370_v40 = vsel %vm498_vm3, %v2209_v14, %v3490_v10  ;;  %v3594_v22 = vld [vmem:[%s4979_s8 + $0xe8] ss:$16 sps:$4 sm:$0xff]   ;;  %v3606_v10 = vld [vmem:[%s4980_s9 + $0xa0] sm:$0xff]  }
0x116e   :  { %v2371_v20 = vsel %vm994_vm4, %v2369_v23, %v3494_v44  ;;  %v2372_v21 = vsel %vm994_vm4, %v2370_v40, %v3495_v15  ;;  %v3607_v11 = vld [vmem:[%s4980_s9 + $0xe8] sm:$0xff]   ;;  %v3609_v23 = vld [vmem:[%s4980_s9 + $0xf0] sm:$0xff]   ;;  %v3611_v15 = vld [vmem:[%s4980_s9 + $0xf8] sm:$0xff]  }
0x116f   :  { %v3610_v40 = vld [vmem:[%s4980_s9 + $0xb0] sm:$0xff]   ;;  %v3612_v44 = vld [vmem:[%s4980_s9 + $0xb8] sm:$0xff]  }
0x119a   :  { %v3498_v26 = vpop.permute.xlu0 %3497 }
0x119b   :  { %v3500_v33 = vunpack.i.h.bf16 %v3498_v26  ;;  %v3499_v34 = vunpack.i.l.bf16 %v3498_v26 }
0x119d   :  { %v2373_v53 = vsel %vm997_vm5, %v2371_v20, %v3499_v34  ;;  %v2374_v1 = vsel %vm997_vm5, %v2372_v21, %v3500_v33 }
0x119e   :  { %v2375_v47 = vpack.c.bf16 %v2374_v1, %v2373_v53 }
0x11a0   :  { %3416 = vmatmul.mubr.msk.bf16.vlgmr.msra.gmra.mrb[44].mxu0 %vm111_vm0, %v2375_v47 }
0x11a1   :  { %2657 = vmatprep.mubr.bf16.mxu0 %v3873_v12 }
0x1273   :  { %v2446_v59 = vpop.f32.mrb[44].mxu0 }
0x1274   :  { %v4835_v28 = vadd.f32 %v2446_v59, %v4493_v49  ;;  %v3417_v37 = vpop.f32.mrb[45].mxu0  ;;  %v3575_v49 = vld [vmem:[%s4979_s8 + $0x84] ss:$16 sps:$4 sm:$0xff]  }
0x1275   :  { %v2449_v24 = vpop.f32.mrb[46].mxu0  ;;  %2582 = vmatprep.subr.bf16.mxu1 %v3575_v49 }
0x1276   :  { %v4838_v32 = vadd.f32 %v2449_v24, %v4496_v52  ;;  %v3418_v30 = vpop.f32.mrb[47].mxu0  ;;  %v2457_v54 = vmul.f32 %v4835_v28, %v4835_v28  ;;  %v3578_v52 = vld [vmem:[%s4979_s8 + $0x8c] ss:$16 sps:$4 sm:$0xff]   ;;  %2583 = vmatpush1.bf16.msra.mxu1 %v3573_v36 }
0x1277   :  { %2625 = vmatprep.subr.bf16.mxu0 %v3578_v52  ;;  %2584 = vmatprep.subr.bf16.mxu1 %v3581_v7 }
0x1278   :  { %v2459_v50 = vsel %vm111_vm0, %v2457_v54, 0.0  ;;  %v2458_v16 = vmul.f32 %v4838_v32, %v4838_v32  ;;  %2626 = vmatpush1.bf16.msra.mxu0 %v3576_v41 }
0x1279   :  { %2460 = vadd.xlane.f32.xlu1 %v2459_v50  ;;  %2627 = vmatprep.subr.bf16.mxu0 %v3584_v9 }
0x127a   :  { %v2462_v55 = vsel %vm111_vm0, %v2458_v16, 0.0  ;;  %2585 = vmatpush1.bf16.msra.mxu1 %v3579_v45 }
0x127b   :  { %2463 = vadd.xlane.f32.xlu0 %v2462_v55  ;;  %2586 = vmatprep.subr.bf16.mxu1 %v3587_v48 }
0x127c   :  { %2628 = vmatpush1.bf16.msra.mxu0 %v3582_v17 }
0x127d   :  { %2629 = vmatprep.subr.bf16.mxu0 %v3590_v18 }
0x127e   :  { %2587 = vmatpush1.bf16.msra.mxu1 %v3585_v56 }
0x127f   :  { %2588 = vmatprep.subr.bf16.mxu1 %v3593_v57 }
0x1280   :  { %2630 = vmatpush1.bf16.msra.mxu0 %v3588_v25 }
0x1281   :  { %2631 = vmatprep.subr.bf16.mxu0 %v3596_v13 }
0x1282   :  { %2589 = vmatpush1.bf16.msra.mxu1 %v3591_v43 }
0x1283   :  { %3277 = vmatprep.subr.bf16.mxu1 %v3597_v4  ;;  %v3615_v4 = vld [vmem:[#allocation8 + $0x4] ss:$8 sps:$4 sm:$0xff]  }
0x1284   :  { %2632 = vmatpush1.bf16.msra.mxu0 %v3594_v22 }
0x1285   :  { %2951 = vmatprep.subr.bf16.mxu0 %v3615_v4 }
0x1306   :  { %v2461_v14 = vpop.xlane.xlu1 %2460 }
0x1307   :  { %v2465_v2 = vmul.f32 0.015625, %v2461_v14 }
0x1308   :  { %v2464_v58 = vpop.xlane.xlu0 %2463 }
0x1309   :  { %v2467_v29 = vadd.f32 1e-05, %v2465_v2  ;;  %v2466_v61 = vmul.f32 0.015625, %v2464_v58 }
0x130b   :  { %3717 = vrsqrt.f32 %v2467_v29  ;;  %v2468_v63 = vadd.f32 1e-05, %v2466_v61 }
0x130d   :  { %3719 = vrsqrt.f32 %v2468_v63 }
0x1315   :  { %v3718_v46 = vpop.eup %3717 }
0x1316   :  { %v2471_v0 = vmul.f32 %v3718_v46, %v4835_v28 }
0x1317   :  { %v3720_v3 = vpop.eup %3719 }
0x1318   :  { %v2472_v62 = vmul.f32 %v3720_v3, %v4838_v32  ;;  %v2479_v31 = vmul.f32 %v3112_v19, %v2471_v0 }
0x131a   :  { %v2480_v60 = vmul.f32 %v3112_v19, %v2472_v62 }
0x131c   :  { %v2481_v27 = vpack.c.bf16 %v2480_v60, %v2479_v31 }
0x131e   :  { %3145 = vmatmul.mubr.msk.bf16.vlgmr.msra.gmra.mrb[44].mxu1 %vm111_vm0, %v2481_v27  ;;  %3146 = vmatmul.mubr.msk.bf16.vlgmr.msra.gmra.mrb[48].mxu0 %vm111_vm0, %v2481_v27 }
0x131f   :  { %2983 = vmatprep.mubr.bf16.mxu0 %v3873_v12  ;;  %3278 = vmatpush3.bf16.msra.mxu1 %v3598_v5  ;;  %v3601_v12 = vld [vmem:[%s4980_s9 + $0xd0] sm:$0xff]   ;;  %v3613_v5 = vld [vmem:[#allocation8] ss:$8 sps:$4 sm:$0xff]  }
0x1320   :  { %3279 = vmatprep.subr.bf16.mxu1 %v3599_v35  ;;  %2952 = vmatpush1.bf16.msra.mxu0 %v3613_v5  ;;  %v3618_v35 = vld [vmem:[#allocation8 + $0x14] ss:$8 sps:$4 sm:$0xff]  }
0x1321   :  { %2953 = vmatprep.subr.bf16.mxu0 %v3618_v35 }
0x1323   :  { %3280 = vmatpush3.bf16.msra.mxu1 %v3600_v42  ;;  %v3616_v42 = vld [vmem:[#allocation8 + $0x10] ss:$8 sps:$4 sm:$0xff]  }
0x1324   :  { %3281 = vmatprep.subr.bf16.mxu1 %v3601_v12  ;;  %2954 = vmatpush1.bf16.msra.mxu0 %v3616_v42  ;;  %v3619_v12 = vld [vmem:[#allocation8 + $0x20] ss:$8 sps:$4 sm:$0xff]  }
0x1327   :  { %3282 = vmatpush3.bf16.msra.mxu1 %v3602_v39  ;;  %v3622_v39 = vld [vmem:[#allocation8 + $0x30] ss:$8 sps:$4 sm:$0xff]  }
0x1328   :  { %3283 = vmatprep.subr.bf16.mxu1 %v3603_v6 }
0x132b   :  { %3284 = vmatpush3.bf16.msra.mxu1 %v3604_v8 }
0x132c   :  { %3285 = vmatprep.subr.bf16.mxu1 %v3605_v38 }
0x132f   :  { %3286 = vmatpush3.bf16.msra.mxu1 %v3606_v10 }
0x1330   :  { %3287 = vmatprep.subr.bf16.mxu1 %v3607_v11 }
0x1333   :  { %3288 = vmatpush3.bf16.msra.mxu1 %v3608_v51 }
0x1334   :  { %3289 = vmatprep.subr.bf16.mxu1 %v3609_v23 }
0x1337   :  { %3290 = vmatpush3.bf16.msra.mxu1 %v3610_v40 }
0x1338   :  { %3291 = vmatprep.subr.bf16.mxu1 %v3611_v15 }
0x133b   :  { %3292 = vmatpush3.bf16.msra.mxu1 %v3612_v44  ;;  %v3199_v44 = vld [vmem:[%s4981_s10] ss:$0 sm:$0xff] }
0x13f1   :  { %v2616_v26 = vpop.f32.mrb[44].mxu1  ;;  %v2659_v33 = vpop.f32.mrb[48].mxu0 }
0x13f2   :  { %v3147_v34 = vmul.f32 -1.442695, %v2616_v26  ;;  %v2618_v20 = vpop.f32.mrb[45].mxu1  ;;  %v2661_v21 = vpop.f32.mrb[49].mxu0 }
0x13f3   :  { %v3148_v53 = vmul.f32 -1.442695, %v2618_v20  ;;  %v2620_v1 = vpop.f32.mrb[46].mxu1  ;;  %v2663_v47 = vpop.f32.mrb[50].mxu0 }
0x13f4   :  { %3721 = vpow2.f32 %v3147_v34  ;;  %v3149_v59 = vmul.f32 -1.442695, %v2620_v1  ;;  %v2622_v37 = vpop.f32.mrb[47].mxu1  ;;  %v2665_v24 = vpop.f32.mrb[51].mxu0 }
0x13f5   :  { %3723 = vpow2.f32 %v3148_v53  ;;  %v3150_v30 = vmul.f32 -1.442695, %v2622_v37 }
0x13f6   :  { %3725 = vpow2.f32 %v3149_v59 }
0x13f7   :  { %3727 = vpow2.f32 %v3150_v30 }
0x13fe   :  { %v3722_v54 = vpop.eup %3721 }
0x13ff   :  { %v3724_v50 = vpop.eup %3723  ;;  %v2680_v16 = vadd.f32 1.0, %v3722_v54 }
0x1400   :  { %v3726_v55 = vpop.eup %3725  ;;  %v2681_v49 = vadd.f32 1.0, %v3724_v50 }
0x1401   :  { %v3728_v52 = vpop.eup %3727  ;;  %3729 = vrcp.f32 %v2680_v16  ;;  %v2682_v36 = vadd.f32 1.0, %v3726_v55 }
0x1402   :  { %3731 = vrcp.f32 %v2681_v49  ;;  %v2683_v41 = vadd.f32 1.0, %v3728_v52 }
0x1403   :  { %3733 = vrcp.f32 %v2682_v36 }
0x1404   :  { %3735 = vrcp.f32 %v2683_v41 }
0x140b   :  { %v3730_v7 = vpop.eup %3729 }
0x140c   :  { %v3732_v9 = vpop.eup %3731  ;;  %v2692_v45 = vmul.f32 %v3730_v7, %v2616_v26 }
0x140d   :  { %v3734_v17 = vpop.eup %3733  ;;  %v2693_v48 = vmul.f32 %v3732_v9, %v2618_v20 }
0x140e   :  { %v3736_v18 = vpop.eup %3735  ;;  %v2696_v56 = vmul.f32 %v2692_v45, %v2659_v33  ;;  %v2694_v25 = vmul.f32 %v3734_v17, %v2620_v1 }
0x140f   :  { %v2697_v43 = vmul.f32 %v2693_v48, %v2661_v21  ;;  %v2695_v57 = vmul.f32 %v3736_v18, %v2622_v37 }
0x1410   :  { %v2698_v22 = vmul.f32 %v2694_v25, %v2663_v47 }
0x1411   :  { %v2699_v13 = vmul.f32 %v2695_v57, %v2665_v24 }
0x1412   :  { %v2700_v14 = vpack.c.bf16 %v2698_v22, %v2696_v56 }
0x1413   :  { %v2701_v2 = vpack.c.bf16 %v2699_v13, %v2697_v43 }
0x1415   :  { %2863 = vmatprep.mubr.bf16.mxu1 %v2701_v2 }
0x1416   :  { %2864 = vmatmul.mubr.bf16.vlgmr.msra.gmra.mrb[48].mxu1 %v2700_v14 }
0x14e9   :  { %v3293_v58 = vpop.f32.mrb[48].mxu1 }
0x14ea   :  { %v3294_v29 = vpop.f32.mrb[49].mxu1 }
0x14eb   :  { %v3295_v61 = vadd.f32 %v3294_v29, %v3293_v58  ;;  %v3296_v63 = vpop.f32.mrb[50].mxu1 }
0x14ec   :  { %v3297_v46 = vpop.f32.mrb[51].mxu1 }
0x14ed   :  { %v2872_v0 = vadd.f32 %v3295_v61, %v4835_v28  ;;  %v3298_v3 = vadd.f32 %v3297_v46, %v3296_v63  ;;  %v3621_v28 = vld [vmem:[#allocation8 + $0x24] ss:$8 sps:$4 sm:$0xff]  }
0x14ee   :  { %2955 = vmatprep.subr.bf16.mxu0 %v3621_v28 }
0x14ef   :  { %v2873_v19 = vadd.f32 %v3298_v3, %v4838_v32  ;;  %v2875_v62 = vmul.f32 %v2872_v0, %v2872_v0  ;;  %2956 = vmatpush1.bf16.msra.mxu0 %v3619_v12  ;;  %v3624_v32 = vld [vmem:[#allocation8 + $0x34] ss:$8 sps:$4 sm:$0xff]  }
0x14f0   :  { %2957 = vmatprep.subr.bf16.mxu0 %v3624_v32 }
0x14f1   :  { %v2877_v31 = vsel %vm111_vm0, %v2875_v62, 0.0  ;;  %v2876_v60 = vmul.f32 %v2873_v19, %v2873_v19 }
0x14f2   :  { %2878 = vadd.xlane.f32.xlu0 %v2877_v31 }
0x14f3   :  { %v2880_v27 = vsel %vm111_vm0, %v2876_v60, 0.0  ;;  %2958 = vmatpush1.bf16.msra.mxu0 %v3622_v39 }
0x14f4   :  { %2881 = vadd.xlane.f32.xlu1 %v2880_v27 }
0x157f   :  { %v2879_v6 = vpop.xlane.xlu0 %2878 }
0x1580   :  { %v2883_v8 = vmul.f32 0.015625, %v2879_v6 }
0x1581   :  { %v2882_v38 = vpop.xlane.xlu1 %2881 }
0x1582   :  { %v2885_v10 = vadd.f32 1e-05, %v2883_v8  ;;  %v2884_v11 = vmul.f32 0.015625, %v2882_v38 }
0x1584   :  { %3737 = vrsqrt.f32 %v2885_v10  ;;  %v2886_v51 = vadd.f32 1e-05, %v2884_v11 }
0x1586   :  { %3739 = vrsqrt.f32 %v2886_v51 }
0x158e   :  { %v3738_v23 = vpop.eup %3737 }
0x158f   :  { %v2889_v40 = vmul.f32 %v3738_v23, %v2872_v0 }
0x1590   :  { %v3740_v15 = vpop.eup %3739 }
0x1591   :  { %v2890_v26 = vmul.f32 %v3740_v15, %v2873_v19  ;;  %v2897_v33 = vmul.f32 %v3199_v44, %v2889_v40 }
0x1593   :  { %v2898_v34 = vmul.f32 %v3199_v44, %v2890_v26 }
0x1595   :  { %v2899_v20 = vpack.c.bf16 %v2898_v34, %v2897_v33 }
0x1597   :  { %3208 = vmatmul.mubr.msk.bf16.vlgmr.msra.gmra.mrb[52].mxu0 %vm111_vm0, %v2899_v20 }
0x166a   :  { %v2985_v21 = vpop.f32.mrb[52].mxu0 }
0x166b   :  { %2994 = vst [vmem:[#allocation10] sm:$0xff] %v2985_v21  ;;  %v2987_v53 = vpop.f32.mrb[53].mxu0 }
0x166c   :  { %2995 = vst [vmem:[#allocation10 + $0x8] sm:$0xff] %v2987_v53  ;;  %v2989_v1 = vpop.f32.mrb[54].mxu0 }
0x166d   :  { %2996 = vst [vmem:[#allocation10 + $0x10] sm:$0xff] %v2989_v1  ;;  %v2991_v47 = vpop.f32.mrb[55].mxu0 }
0x166e   :  { %2997 = vst [vmem:[#allocation10 + $0x18] sm:$0xff] %v2991_v47 }
0x166f   :  { %3846 = shalt.err (!%p3843_p8)
}
0x1670   :  { %s3847_s0 = scalar_lea.hbm %s4983_s12, 512 }
0x1671   :  { %p3848_p9 = scmp.ne.s32.totalorder %s4983_s12, %s3847_s0  ;;  %p3851_p10 = scmp.lt.u32.totalorder %s3847_s0, %s4983_s12 }
0x1673   :  { %p3853_p11 = pnand %p3851_p10, %p3848_p9 }
0x1675   :  { %3856 = shalt.err (!%p3853_p11)
}
0x1676   :  { %s3886_s6 = smov 256  }
0x1677   :  { %3009 = dma.vmem_to_hbm [thread:$0]  %s3004_s18, 512, %s4983_s12, [#allocation4], %s3886_s6, %s3886_s6, %s3883_s28  }
0x1678   :  { %3863 = dma.done.wait [#allocation4], 512  }
0x1679   :  { %3864 = vsyncadd [#allocation4], 4294966784 }
0x167a   :  { %3013 = vsyncpa [#allocation3], 1 }
0x167b   :  { %3014 = vsyncpa [#allocation6], 1 }
0x167c   :  { %3015 = vsyncpa [#allocation9], 1 }
0x167d   :  { %3016 = vsyncpa [#allocation4], 1 }

</bundles_post_ra>
